<compile_context>
chip_gen: v7x
topology: tpu7x:2x2x1
jax: 0.10.0
libtpu: 0.0.40
codegen_flags: <defaults>
</compile_context>

<pallas_src>
import numpy as np
import jax
import jax.numpy as jnp
from jax.experimental import pallas as pl
from jax.experimental.pallas import tpu as pltpu

# ----------------------- small, self-consistent configuration -----------------------
SAMPLE_RATE = 16000
N_FFT = 400
HOP_LENGTH = 160
N_MELS = 32                      # config.n_mels
N_FREQ = N_FFT // 2 + 1          # 201
N_FREQ_PAD = 256                 # lane-friendly padding of the frequency axis

WINDOW_SIZE = 1600               # scaled-down window_size (orig 7500)
STEP_SIZE = 800                  # scaled-down step_size   (orig 3750)

CONV_CH = 16                     # conv output channels
CONV_K = 3                       # conv kernel width along time (freq kernel spans all mels)
HIDDEN = 16                      # GRU hidden size
N_CLASSES = 2

N_FRAMES = 1 + STEP_SIZE // HOP_LENGTH      # frames per step (center=True)  -> 6
T_CONV = N_FRAMES - CONV_K + 1              # conv / GRU timesteps per step   -> 4


def _vmem():
    return pl.BlockSpec(memory_space=pltpu.MemorySpace.VMEM)


# ------------------------------- fused Pallas kernel ----------------------------------
def _fused_step_kernel(frames_ref, dftw_ref, melfb_ref,
                       convw_ref, convb_ref,
                       wih_ref, whh_ref, bih_ref, bhh_ref, h0_ref,
                       attnw_ref, attnb_ref, attnv_ref, clsw_ref, clsb_ref,
                       probs_ref, gru_ref, hT_ref):
    f32 = jnp.float32

    # ---- log-mel spectrogram: one lane-dense DFT matmul (cos|sin), power, mel, log ----
    y = jnp.dot(frames_ref[...], dftw_ref[...], preferred_element_type=f32)     # (F, 2*256)
    re = y[:, :N_FREQ_PAD]
    im = y[:, N_FREQ_PAD:]
    power = re * re + im * im                                                   # |STFT|^2
    mel = jnp.dot(power, melfb_ref[...], preferred_element_type=f32)            # (F, n_mels)
    logmel = jnp.log(jnp.clip(mel, 1e-9, 1e9))                                  # log(clamp)

    # ---- conv (im2col, single MXU pass) + ReLU ----
    xcat = jnp.concatenate([logmel[k:k + T_CONV, :] for k in range(CONV_K)], axis=1)   # (T, K*32)
    conv = jnp.dot(xcat, convw_ref[...], preferred_element_type=f32) + convb_ref[...]
    conv = jnp.maximum(conv, 0.0)                                               # (T, C)

    # ---- GRU: fused input projection, one dot per recurrence step ----
    gi = jnp.dot(conv, wih_ref[...], preferred_element_type=f32) + bih_ref[...]  # (T, 3H)
    whh = whh_ref[...]
    bhh = bhh_ref[...]
    h = h0_ref[...]
    H = HIDDEN
    rows = []
    for t in range(T_CONV):                                  # static unrolled time loop
        gh = jnp.dot(h, whh, preferred_element_type=f32) + bhh                  # (1, 3H)
        gi_t = gi[t:t + 1, :]
        r = jax.nn.sigmoid(gi_t[:, 0:H] + gh[:, 0:H])
        z = jax.nn.sigmoid(gi_t[:, H:2 * H] + gh[:, H:2 * H])
        n = jnp.tanh(gi_t[:, 2 * H:3 * H] + r * gh[:, 2 * H:3 * H])
        h = (1.0 - z) * n + z * h
        rows.append(h)
    g = jnp.concatenate(rows, axis=0)                                            # (T, H)
    gru_ref[...] = g
    hT_ref[...] = h

    # ---- soft attention over time + linear classifier + softmax ----
    u = jnp.tanh(jnp.dot(g, attnw_ref[...], preferred_element_type=f32) + attnb_ref[...])
    e = jnp.dot(u, attnv_ref[...], preferred_element_type=f32)                   # (T, 1)
    e = e - jnp.max(e, axis=0, keepdims=True)
    w = jnp.exp(e)
    alpha = w / jnp.sum(w, axis=0, keepdims=True)
    ctx = jnp.sum(alpha * g, axis=0, keepdims=True)                              # (1, H)
    logits = jnp.dot(ctx, clsw_ref[...], preferred_element_type=f32) + clsb_ref[...]
    logits = logits - jnp.max(logits, axis=-1, keepdims=True)
    p = jnp.exp(logits)
    probs_ref[...] = p / jnp.sum(p, axis=-1, keepdims=True)                       # softmax


def build_fused_call():
    return pl.pallas_call(
        _fused_step_kernel,
        out_shape=(
            jax.ShapeDtypeStruct((1, N_CLASSES), jnp.float32),   # softmax probabilities
            jax.ShapeDtypeStruct((T_CONV, HIDDEN), jnp.float32),  # gru outputs of this step
            jax.ShapeDtypeStruct((1, HIDDEN), jnp.float32),       # final GRU hidden
        ),
        in_specs=[_vmem()] * 15,
        out_specs=(_vmem(), _vmem(), _vmem()),
    )


# ---------------------------- host-side constant builders -----------------------------
def _dft_mats():
    """Hann-windowed DFT as one (n_fft, 2*N_FREQ_PAD) matrix: [cos | -sin], zero-padded."""
    n = np.arange(N_FFT, dtype=np.float64)[:, None]
    f = np.arange(N_FREQ, dtype=np.float64)[None, :]
    ang = 2.0 * np.pi * n * f / N_FFT
    win = 0.5 * (1.0 - np.cos(2.0 * np.pi * np.arange(N_FFT) / N_FFT))  # periodic hann
    cosw = np.zeros((N_FFT, N_FREQ_PAD), np.float32)
    sinw = np.zeros((N_FFT, N_FREQ_PAD), np.float32)
    cosw[:, :N_FREQ] = (win[:, None] * np.cos(ang)).astype(np.float32)
    sinw[:, :N_FREQ] = (win[:, None] * -np.sin(ang)).astype(np.float32)
    return np.concatenate([cosw, sinw], axis=1)                         # (400, 512)


def _mel_filterbank(n_freqs, n_mels, sample_rate, f_min=0.0, f_max=None):
    f_max = f_max or sample_rate / 2.0
    hz_to_mel = lambda f: 2595.0 * np.log10(1.0 + f / 700.0)
    mel_to_hz = lambda m: 700.0 * (10.0 ** (m / 2595.0) - 1.0)
    all_freqs = np.linspace(0.0, sample_rate / 2.0, n_freqs)
    f_pts = mel_to_hz(np.linspace(hz_to_mel(f_min), hz_to_mel(f_max), n_mels + 2))
    fb = np.zeros((N_FREQ_PAD, n_mels), np.float32)                     # zero-padded freq rows
    for i in range(n_mels):
        lo, ce, hi = f_pts[i], f_pts[i + 1], f_pts[i + 2]
        up = (all_freqs - lo) / (ce - lo)
        dn = (hi - all_freqs) / (hi - ce)
        fb[:n_freqs, i] = np.maximum(0.0, np.minimum(up, dn))
    return fb                                                           # (256, 32)


def init_params(key):
    """Synthetic deterministic model weights, generated directly in the fused layouts."""
    ks = jax.random.split(key, 11)
    nrm = lambda k, shape, s: jax.random.normal(k, shape, jnp.float32) * s
    return dict(
        conv_w=nrm(ks[0], (CONV_K * N_MELS, CONV_CH), 0.1),   # im2col layout [w0; w1; w2]
        conv_b=nrm(ks[1], (1, CONV_CH), 0.1),
        gru_wih=nrm(ks[2], (CONV_CH, 3 * HIDDEN), 0.2),       # gate order [r | z | n]
        gru_whh=nrm(ks[3], (HIDDEN, 3 * HIDDEN), 0.2),
        gru_bih=nrm(ks[4], (1, 3 * HIDDEN), 0.1),
        gru_bhh=nrm(ks[5], (1, 3 * HIDDEN), 0.1),
        attn_w=nrm(ks[6], (HIDDEN, HIDDEN), 0.2),
        attn_b=nrm(ks[7], (1, HIDDEN), 0.1),
        attn_v=nrm(ks[8], (HIDDEN, 1), 0.2),
        cls_w=nrm(ks[9], (HIDDEN, N_CLASSES), 0.2),
        cls_b=nrm(ks[10], (1, N_CLASSES), 0.1),
    )


class Streaming:
    """Stateful streaming wrapper reproducing the PyTorch module's buffer logic."""

    def __init__(self, params, window_size=WINDOW_SIZE, step_size=STEP_SIZE):
        self.window_size = window_size
        self.step_size = step_size
        # step_size (in samples) always exceeds the GRU frame count -> the original module's
        # gru_outputs history slice `[:, step_size:, :]` is always empty (see model_forward).
        assert step_size >= T_CONV

        # device-resident constants / weights, uploaded exactly once
        self.dftw = jnp.asarray(_dft_mats())
        self.melfb = jnp.asarray(_mel_filterbank(N_FREQ, N_MELS, SAMPLE_RATE))
        self.params = {k: jnp.asarray(v) for k, v in params.items()}

        # framing (center=True, reflect) done on host with a precomputed index matrix
        self._pad = N_FFT // 2
        self._frame_idx = (np.arange(N_FRAMES)[:, None] * HOP_LENGTH
                           + np.arange(N_FFT)[None, :])

        # single fused kernel for the whole model forward (jitted once, reused every step)
        self._fused = jax.jit(build_fused_call())

        # streaming state: audio buffer on host, model state device-resident
        self.buffer = np.zeros((1, 0), np.float32)
        self.gru_outputs = jnp.zeros((1, 0, 1), jnp.float32)
        self.hidden = jnp.zeros((1, HIDDEN), jnp.float32)   # zeros == PyTorch GRU hidden=None
        self.prev_proba = 0.0

    # -------------------------------- streaming logic ---------------------------------
    def forward(self, chunk):
        chunk = np.asarray(chunk, np.float32)
        assert chunk.ndim == 2
        max_proba = 0.0
        if self.buffer.shape[-1] < self.window_size:
            need_len = self.window_size - self.buffer.shape[-1]
            self.buffer = np.concatenate([self.buffer, chunk[:, :need_len]], axis=1)
            chunk = chunk[:, need_len:]
            if self.buffer.shape[-1] == self.window_size:
                max_proba = self.model_forward(self.buffer)
            else:
                return self.prev_proba
        chunks = [chunk[:, i:i + self.step_size]
                  for i in range(0, chunk.shape[1], self.step_size)]
        for ch in chunks:
            self.buffer = np.concatenate([self.buffer[:, self.step_size:], ch], axis=1)
            if self.buffer.shape[-1] == self.window_size:
                cur_proba = self.model_forward(self.buffer)
                max_proba = max(max_proba, cur_proba)
        self.prev_proba = max_proba
        return max_proba

    def _frames(self, x):
        xp = np.pad(np.asarray(x, np.float32), (self._pad, self._pad), mode="reflect")
        return xp[self._frame_idx]                                   # (N_FRAMES, N_FFT)

    def model_forward(self, x):
        p = self.params
        x = x[:, -self.step_size:]                                   # gru_outputs buffer never None
        frames = self._frames(x[0])                                  # only ~9.6 KB crosses H2D/step

        probs, gru_out, hT = self._fused(
            frames, self.dftw, self.melfb,
            p["conv_w"], p["conv_b"],
            p["gru_wih"], p["gru_whh"], p["gru_bih"], p["gru_bhh"], self.hidden,
            p["attn_w"], p["attn_b"], p["attn_v"], p["cls_w"], p["cls_b"])

        self.hidden = hT                                             # stays on device
        # Original: cat([gru_outputs[:, step_size:, :], gru_outputs_cur], dim=1).  step_size is in
        # audio samples and always exceeds T_CONV frames, so the history slice is empty and
        # attention only ever sees the current step's GRU outputs — reproduced faithfully here.
        # TODO(synk): if a frame-unit sliding GRU history was intended, slice by frames instead.
        self.gru_outputs = gru_out[None]                             # device-resident (1, T, H)

        probs = jax.block_until_ready(probs)
        return float(probs[0, 1])                                    # softmax(output)[0][1].item()


if __name__ == "__main__":
    key = jax.random.PRNGKey(0)
    pkey, k1, k2 = jax.random.split(key, 3)
    params = init_params(pkey)
    streaming = Streaming(params)

    # first chunk fills the window + one extra step; second chunk advances one more step
    chunk1 = np.asarray(jax.random.normal(k1, (1, WINDOW_SIZE + STEP_SIZE), jnp.float32) * 0.1)
    chunk2 = np.asarray(jax.random.normal(k2, (1, STEP_SIZE), jnp.float32) * 0.1)

    p1 = streaming.forward(chunk1)
    p2 = streaming.forward(chunk2)

    assert np.isfinite(p1) and np.isfinite(p2)
    assert 0.0 <= p1 <= 1.0 and 0.0 <= p2 <= 1.0
    print("KERNEL_OK")
</pallas_src>

<mosaic_0001>
module attributes {stable_mosaic.version = 11 : i64} {
  func.func @_fused_step_kernel(%arg0: memref<6x400xf32, #tpu.memory_space<vmem>>, %arg1: memref<400x512xf32, #tpu.memory_space<vmem>>, %arg2: memref<256x32xf32, #tpu.memory_space<vmem>>, %arg3: memref<96x16xf32, #tpu.memory_space<vmem>>, %arg4: memref<1x16xf32, #tpu.memory_space<vmem>>, %arg5: memref<16x48xf32, #tpu.memory_space<vmem>>, %arg6: memref<16x48xf32, #tpu.memory_space<vmem>>, %arg7: memref<1x48xf32, #tpu.memory_space<vmem>>, %arg8: memref<1x48xf32, #tpu.memory_space<vmem>>, %arg9: memref<1x16xf32, #tpu.memory_space<vmem>>, %arg10: memref<16x16xf32, #tpu.memory_space<vmem>>, %arg11: memref<1x16xf32, #tpu.memory_space<vmem>>, %arg12: memref<16x1xf32, #tpu.memory_space<vmem>>, %arg13: memref<16x2xf32, #tpu.memory_space<vmem>>, %arg14: memref<1x2xf32, #tpu.memory_space<vmem>>, %arg15: memref<1x2xf32, #tpu.memory_space<vmem>>, %arg16: memref<4x16xf32, #tpu.memory_space<vmem>>, %arg17: memref<1x16xf32, #tpu.memory_space<vmem>>) attributes {dimension_semantics = [], scalar_prefetch = 0 : i64, scratch_operands = 0 : i64, tpu.core_type = #tpu.core_type<tc>} {
    %c0 = arith.constant 0 : index
    %c0_0 = arith.constant 0 : index
    %0 = vector.load %arg0[%c0, %c0_0] : memref<6x400xf32, #tpu.memory_space<vmem>>, vector<6x400xf32>
    %c0_1 = arith.constant 0 : index
    %c0_2 = arith.constant 0 : index
    %1 = vector.load %arg1[%c0_1, %c0_2] : memref<400x512xf32, #tpu.memory_space<vmem>>, vector<400x512xf32>
    %cst = arith.constant dense<0.000000e+00> : vector<6x512xf32>
    %2 = tpu.matmul %0, %1, %cst {dimension_numbers = #tpu.dot_dimension_numbers<[1], [0], [0], [1], [0, 0, 1, 1], [], []>} : vector<6x400xf32>, vector<400x512xf32>, vector<6x512xf32> -> vector<6x512xf32>
    %3 = vector.extract_strided_slice %2 {offsets = [0, 0], sizes = [6, 256], strides = [1, 1]} : vector<6x512xf32> to vector<6x256xf32>
    %4 = vector.extract_strided_slice %2 {offsets = [0, 256], sizes = [6, 256], strides = [1, 1]} : vector<6x512xf32> to vector<6x256xf32>
    %5 = arith.mulf %3, %3 : vector<6x256xf32>
    %6 = arith.mulf %4, %4 : vector<6x256xf32>
    %7 = arith.addf %5, %6 : vector<6x256xf32>
    %c0_3 = arith.constant 0 : index
    %c0_4 = arith.constant 0 : index
    %8 = vector.load %arg2[%c0_3, %c0_4] : memref<256x32xf32, #tpu.memory_space<vmem>>, vector<256x32xf32>
    %cst_5 = arith.constant dense<0.000000e+00> : vector<6x32xf32>
    %9 = tpu.matmul %7, %8, %cst_5 {dimension_numbers = #tpu.dot_dimension_numbers<[1], [0], [0], [1], [0, 0, 1, 1], [], []>} : vector<6x256xf32>, vector<256x32xf32>, vector<6x32xf32> -> vector<6x32xf32>
    %cst_6 = arith.constant 9.99999971E-10 : f32
    %cst_7 = arith.constant 1.000000e+09 : f32
    %10 = vector.broadcast %cst_6 : f32 to vector<6x32xf32>
    %11 = arith.maximumf %10, %9 : vector<6x32xf32>
    %12 = vector.broadcast %cst_7 : f32 to vector<6x32xf32>
    %13 = arith.minimumf %12, %11 : vector<6x32xf32>
    %14 = math.log %13 : vector<6x32xf32>
    %15 = vector.extract_strided_slice %14 {offsets = [0, 0], sizes = [4, 32], strides = [1, 1]} : vector<6x32xf32> to vector<4x32xf32>
    %16 = vector.extract_strided_slice %14 {offsets = [1, 0], sizes = [4, 32], strides = [1, 1]} : vector<6x32xf32> to vector<4x32xf32>
    %17 = vector.extract_strided_slice %14 {offsets = [2, 0], sizes = [4, 32], strides = [1, 1]} : vector<6x32xf32> to vector<4x32xf32>
    %18 = tpu.concatenate %15, %16, %17 in 1 : vector<4x32xf32>, vector<4x32xf32>, vector<4x32xf32> -> vector<4x96xf32>
    %c0_8 = arith.constant 0 : index
    %c0_9 = arith.constant 0 : index
    %19 = vector.load %arg3[%c0_8, %c0_9] : memref<96x16xf32, #tpu.memory_space<vmem>>, vector<96x16xf32>
    %cst_10 = arith.constant dense<0.000000e+00> : vector<4x16xf32>
    %20 = tpu.matmul %18, %19, %cst_10 {dimension_numbers = #tpu.dot_dimension_numbers<[1], [0], [0], [1], [0, 0, 1, 1], [], []>} : vector<4x96xf32>, vector<96x16xf32>, vector<4x16xf32> -> vector<4x16xf32>
    %c0_11 = arith.constant 0 : index
    %c0_12 = arith.constant 0 : index
    %21 = vector.load %arg4[%c0_11, %c0_12] : memref<1x16xf32, #tpu.memory_space<vmem>>, vector<1x16xf32>
    %22 = vector.broadcast %21 : vector<1x16xf32> to vector<4x16xf32>
    %23 = arith.addf %20, %22 : vector<4x16xf32>
    %cst_13 = arith.constant 0.000000e+00 : f32
    %24 = vector.broadcast %cst_13 : f32 to vector<4x16xf32>
    %25 = arith.maximumf %23, %24 : vector<4x16xf32>
    %c0_14 = arith.constant 0 : index
    %c0_15 = arith.constant 0 : index
    %26 = vector.load %arg5[%c0_14, %c0_15] : memref<16x48xf32, #tpu.memory_space<vmem>>, vector<16x48xf32>
    %cst_16 = arith.constant dense<0.000000e+00> : vector<4x48xf32>
    %27 = tpu.matmul %25, %26, %cst_16 {dimension_numbers = #tpu.dot_dimension_numbers<[1], [0], [0], [1], [0, 0, 1, 1], [], []>} : vector<4x16xf32>, vector<16x48xf32>, vector<4x48xf32> -> vector<4x48xf32>
    %c0_17 = arith.constant 0 : index
    %c0_18 = arith.constant 0 : index
    %28 = vector.load %arg7[%c0_17, %c0_18] : memref<1x48xf32, #tpu.memory_space<vmem>>, vector<1x48xf32>
    %29 = vector.broadcast %28 : vector<1x48xf32> to vector<4x48xf32>
    %30 = arith.addf %27, %29 : vector<4x48xf32>
    %c0_19 = arith.constant 0 : index
    %c0_20 = arith.constant 0 : index
    %31 = vector.load %arg6[%c0_19, %c0_20] : memref<16x48xf32, #tpu.memory_space<vmem>>, vector<16x48xf32>
    %c0_21 = arith.constant 0 : index
    %c0_22 = arith.constant 0 : index
    %32 = vector.load %arg8[%c0_21, %c0_22] : memref<1x48xf32, #tpu.memory_space<vmem>>, vector<1x48xf32>
    %c0_23 = arith.constant 0 : index
    %c0_24 = arith.constant 0 : index
    %33 = vector.load %arg9[%c0_23, %c0_24] : memref<1x16xf32, #tpu.memory_space<vmem>>, vector<1x16xf32>
    %cst_25 = arith.constant dense<0.000000e+00> : vector<1x48xf32>
    %34 = tpu.matmul %33, %31, %cst_25 {dimension_numbers = #tpu.dot_dimension_numbers<[1], [0], [0], [1], [0, 0, 1, 1], [], []>} : vector<1x16xf32>, vector<16x48xf32>, vector<1x48xf32> -> vector<1x48xf32>
    %35 = arith.addf %34, %32 : vector<1x48xf32>
    %36 = vector.extract_strided_slice %30 {offsets = [0, 0], sizes = [1, 48], strides = [1, 1]} : vector<4x48xf32> to vector<1x48xf32>
    %37 = vector.extract_strided_slice %36 {offsets = [0, 0], sizes = [1, 16], strides = [1, 1]} : vector<1x48xf32> to vector<1x16xf32>
    %38 = vector.extract_strided_slice %35 {offsets = [0, 0], sizes = [1, 16], strides = [1, 1]} : vector<1x48xf32> to vector<1x16xf32>
    %39 = arith.addf %37, %38 : vector<1x16xf32>
    %40 = arith.negf %39 : vector<1x16xf32>
    %41 = math.exp %40 : vector<1x16xf32>
    %cst_26 = arith.constant 1.000000e+00 : f32
    %42 = vector.broadcast %cst_26 : f32 to vector<1x16xf32>
    %43 = arith.addf %42, %41 : vector<1x16xf32>
    %44 = arith.divf %42, %43 : vector<1x16xf32>
    %45 = vector.extract_strided_slice %36 {offsets = [0, 16], sizes = [1, 16], strides = [1, 1]} : vector<1x48xf32> to vector<1x16xf32>
    %46 = vector.extract_strided_slice %35 {offsets = [0, 16], sizes = [1, 16], strides = [1, 1]} : vector<1x48xf32> to vector<1x16xf32>
    %47 = arith.addf %45, %46 : vector<1x16xf32>
    %48 = arith.negf %47 : vector<1x16xf32>
    %49 = math.exp %48 : vector<1x16xf32>
    %cst_27 = arith.constant 1.000000e+00 : f32
    %50 = vector.broadcast %cst_27 : f32 to vector<1x16xf32>
    %51 = arith.addf %50, %49 : vector<1x16xf32>
    %52 = arith.divf %50, %51 : vector<1x16xf32>
    %53 = vector.extract_strided_slice %36 {offsets = [0, 32], sizes = [1, 16], strides = [1, 1]} : vector<1x48xf32> to vector<1x16xf32>
    %54 = vector.extract_strided_slice %35 {offsets = [0, 32], sizes = [1, 16], strides = [1, 1]} : vector<1x48xf32> to vector<1x16xf32>
    %55 = arith.mulf %44, %54 : vector<1x16xf32>
    %56 = arith.addf %53, %55 : vector<1x16xf32>
    %57 = math.tanh %56 : vector<1x16xf32>
    %cst_28 = arith.constant 1.000000e+00 : f32
    %58 = vector.broadcast %cst_28 : f32 to vector<1x16xf32>
    %59 = arith.subf %58, %52 : vector<1x16xf32>
    %60 = arith.mulf %59, %57 : vector<1x16xf32>
    %61 = arith.mulf %52, %33 : vector<1x16xf32>
    %62 = arith.addf %60, %61 : vector<1x16xf32>
    %cst_29 = arith.constant dense<0.000000e+00> : vector<1x48xf32>
    %63 = tpu.matmul %62, %31, %cst_29 {dimension_numbers = #tpu.dot_dimension_numbers<[1], [0], [0], [1], [0, 0, 1, 1], [], []>} : vector<1x16xf32>, vector<16x48xf32>, vector<1x48xf32> -> vector<1x48xf32>
    %64 = arith.addf %63, %32 : vector<1x48xf32>
    %65 = vector.extract_strided_slice %30 {offsets = [1, 0], sizes = [1, 48], strides = [1, 1]} : vector<4x48xf32> to vector<1x48xf32>
    %66 = vector.extract_strided_slice %65 {offsets = [0, 0], sizes = [1, 16], strides = [1, 1]} : vector<1x48xf32> to vector<1x16xf32>
    %67 = vector.extract_strided_slice %64 {offsets = [0, 0], sizes = [1, 16], strides = [1, 1]} : vector<1x48xf32> to vector<1x16xf32>
    %68 = arith.addf %66, %67 : vector<1x16xf32>
    %69 = arith.negf %68 : vector<1x16xf32>
    %70 = math.exp %69 : vector<1x16xf32>
    %cst_30 = arith.constant 1.000000e+00 : f32
    %71 = vector.broadcast %cst_30 : f32 to vector<1x16xf32>
    %72 = arith.addf %71, %70 : vector<1x16xf32>
    %73 = arith.divf %71, %72 : vector<1x16xf32>
    %74 = vector.extract_strided_slice %65 {offsets = [0, 16], sizes = [1, 16], strides = [1, 1]} : vector<1x48xf32> to vector<1x16xf32>
    %75 = vector.extract_strided_slice %64 {offsets = [0, 16], sizes = [1, 16], strides = [1, 1]} : vector<1x48xf32> to vector<1x16xf32>
    %76 = arith.addf %74, %75 : vector<1x16xf32>
    %77 = arith.negf %76 : vector<1x16xf32>
    %78 = math.exp %77 : vector<1x16xf32>
    %cst_31 = arith.constant 1.000000e+00 : f32
    %79 = vector.broadcast %cst_31 : f32 to vector<1x16xf32>
    %80 = arith.addf %79, %78 : vector<1x16xf32>
    %81 = arith.divf %79, %80 : vector<1x16xf32>
    %82 = vector.extract_strided_slice %65 {offsets = [0, 32], sizes = [1, 16], strides = [1, 1]} : vector<1x48xf32> to vector<1x16xf32>
    %83 = vector.extract_strided_slice %64 {offsets = [0, 32], sizes = [1, 16], strides = [1, 1]} : vector<1x48xf32> to vector<1x16xf32>
    %84 = arith.mulf %73, %83 : vector<1x16xf32>
    %85 = arith.addf %82, %84 : vector<1x16xf32>
    %86 = math.tanh %85 : vector<1x16xf32>
    %cst_32 = arith.constant 1.000000e+00 : f32
    %87 = vector.broadcast %cst_32 : f32 to vector<1x16xf32>
    %88 = arith.subf %87, %81 : vector<1x16xf32>
    %89 = arith.mulf %88, %86 : vector<1x16xf32>
    %90 = arith.mulf %81, %62 : vector<1x16xf32>
    %91 = arith.addf %89, %90 : vector<1x16xf32>
    %cst_33 = arith.constant dense<0.000000e+00> : vector<1x48xf32>
    %92 = tpu.matmul %91, %31, %cst_33 {dimension_numbers = #tpu.dot_dimension_numbers<[1], [0], [0], [1], [0, 0, 1, 1], [], []>} : vector<1x16xf32>, vector<16x48xf32>, vector<1x48xf32> -> vector<1x48xf32>
    %93 = arith.addf %92, %32 : vector<1x48xf32>
    %94 = vector.extract_strided_slice %30 {offsets = [2, 0], sizes = [1, 48], strides = [1, 1]} : vector<4x48xf32> to vector<1x48xf32>
    %95 = vector.extract_strided_slice %94 {offsets = [0, 0], sizes = [1, 16], strides = [1, 1]} : vector<1x48xf32> to vector<1x16xf32>
    %96 = vector.extract_strided_slice %93 {offsets = [0, 0], sizes = [1, 16], strides = [1, 1]} : vector<1x48xf32> to vector<1x16xf32>
    %97 = arith.addf %95, %96 : vector<1x16xf32>
    %98 = arith.negf %97 : vector<1x16xf32>
    %99 = math.exp %98 : vector<1x16xf32>
    %cst_34 = arith.constant 1.000000e+00 : f32
    %100 = vector.broadcast %cst_34 : f32 to vector<1x16xf32>
    %101 = arith.addf %100, %99 : vector<1x16xf32>
    %102 = arith.divf %100, %101 : vector<1x16xf32>
    %103 = vector.extract_strided_slice %94 {offsets = [0, 16], sizes = [1, 16], strides = [1, 1]} : vector<1x48xf32> to vector<1x16xf32>
    %104 = vector.extract_strided_slice %93 {offsets = [0, 16], sizes = [1, 16], strides = [1, 1]} : vector<1x48xf32> to vector<1x16xf32>
    %105 = arith.addf %103, %104 : vector<1x16xf32>
    %106 = arith.negf %105 : vector<1x16xf32>
    %107 = math.exp %106 : vector<1x16xf32>
    %cst_35 = arith.constant 1.000000e+00 : f32
    %108 = vector.broadcast %cst_35 : f32 to vector<1x16xf32>
    %109 = arith.addf %108, %107 : vector<1x16xf32>
    %110 = arith.divf %108, %109 : vector<1x16xf32>
    %111 = vector.extract_strided_slice %94 {offsets = [0, 32], sizes = [1, 16], strides = [1, 1]} : vector<1x48xf32> to vector<1x16xf32>
    %112 = vector.extract_strided_slice %93 {offsets = [0, 32], sizes = [1, 16], strides = [1, 1]} : vector<1x48xf32> to vector<1x16xf32>
    %113 = arith.mulf %102, %112 : vector<1x16xf32>
    %114 = arith.addf %111, %113 : vector<1x16xf32>
    %115 = math.tanh %114 : vector<1x16xf32>
    %cst_36 = arith.constant 1.000000e+00 : f32
    %116 = vector.broadcast %cst_36 : f32 to vector<1x16xf32>
    %117 = arith.subf %116, %110 : vector<1x16xf32>
    %118 = arith.mulf %117, %115 : vector<1x16xf32>
    %119 = arith.mulf %110, %91 : vector<1x16xf32>
    %120 = arith.addf %118, %119 : vector<1x16xf32>
    %cst_37 = arith.constant dense<0.000000e+00> : vector<1x48xf32>
    %121 = tpu.matmul %120, %31, %cst_37 {dimension_numbers = #tpu.dot_dimension_numbers<[1], [0], [0], [1], [0, 0, 1, 1], [], []>} : vector<1x16xf32>, vector<16x48xf32>, vector<1x48xf32> -> vector<1x48xf32>
    %122 = arith.addf %121, %32 : vector<1x48xf32>
    %123 = vector.extract_strided_slice %30 {offsets = [3, 0], sizes = [1, 48], strides = [1, 1]} : vector<4x48xf32> to vector<1x48xf32>
    %124 = vector.extract_strided_slice %123 {offsets = [0, 0], sizes = [1, 16], strides = [1, 1]} : vector<1x48xf32> to vector<1x16xf32>
    %125 = vector.extract_strided_slice %122 {offsets = [0, 0], sizes = [1, 16], strides = [1, 1]} : vector<1x48xf32> to vector<1x16xf32>
    %126 = arith.addf %124, %125 : vector<1x16xf32>
    %127 = arith.negf %126 : vector<1x16xf32>
    %128 = math.exp %127 : vector<1x16xf32>
    %cst_38 = arith.constant 1.000000e+00 : f32
    %129 = vector.broadcast %cst_38 : f32 to vector<1x16xf32>
    %130 = arith.addf %129, %128 : vector<1x16xf32>
    %131 = arith.divf %129, %130 : vector<1x16xf32>
    %132 = vector.extract_strided_slice %123 {offsets = [0, 16], sizes = [1, 16], strides = [1, 1]} : vector<1x48xf32> to vector<1x16xf32>
    %133 = vector.extract_strided_slice %122 {offsets = [0, 16], sizes = [1, 16], strides = [1, 1]} : vector<1x48xf32> to vector<1x16xf32>
    %134 = arith.addf %132, %133 : vector<1x16xf32>
    %135 = arith.negf %134 : vector<1x16xf32>
    %136 = math.exp %135 : vector<1x16xf32>
    %cst_39 = arith.constant 1.000000e+00 : f32
    %137 = vector.broadcast %cst_39 : f32 to vector<1x16xf32>
    %138 = arith.addf %137, %136 : vector<1x16xf32>
    %139 = arith.divf %137, %138 : vector<1x16xf32>
    %140 = vector.extract_strided_slice %123 {offsets = [0, 32], sizes = [1, 16], strides = [1, 1]} : vector<1x48xf32> to vector<1x16xf32>
    %141 = vector.extract_strided_slice %122 {offsets = [0, 32], sizes = [1, 16], strides = [1, 1]} : vector<1x48xf32> to vector<1x16xf32>
    %142 = arith.mulf %131, %141 : vector<1x16xf32>
    %143 = arith.addf %140, %142 : vector<1x16xf32>
    %144 = math.tanh %143 : vector<1x16xf32>
    %cst_40 = arith.constant 1.000000e+00 : f32
    %145 = vector.broadcast %cst_40 : f32 to vector<1x16xf32>
    %146 = arith.subf %145, %139 : vector<1x16xf32>
    %147 = arith.mulf %146, %144 : vector<1x16xf32>
    %148 = arith.mulf %139, %120 : vector<1x16xf32>
    %149 = arith.addf %147, %148 : vector<1x16xf32>
    %150 = tpu.concatenate %62, %91, %120, %149 in 0 : vector<1x16xf32>, vector<1x16xf32>, vector<1x16xf32>, vector<1x16xf32> -> vector<4x16xf32>
    %c0_41 = arith.constant 0 : index
    %c0_42 = arith.constant 0 : index
    %151 = vector.load %arg16[%c0_41, %c0_42] : memref<4x16xf32, #tpu.memory_space<vmem>>, vector<4x16xf32>
    tpu.vector_store %arg16[%c0_41, %c0_42], %150 {strides = array<i32>} : memref<4x16xf32, #tpu.memory_space<vmem>>, vector<4x16xf32>,
    %c0_43 = arith.constant 0 : index
    %c0_44 = arith.constant 0 : index
    %152 = vector.load %arg17[%c0_43, %c0_44] : memref<1x16xf32, #tpu.memory_space<vmem>>, vector<1x16xf32>
    tpu.vector_store %arg17[%c0_43, %c0_44], %149 {strides = array<i32>} : memref<1x16xf32, #tpu.memory_space<vmem>>, vector<1x16xf32>,
    %c0_45 = arith.constant 0 : index
    %c0_46 = arith.constant 0 : index
    %153 = vector.load %arg10[%c0_45, %c0_46] : memref<16x16xf32, #tpu.memory_space<vmem>>, vector<16x16xf32>
    %cst_47 = arith.constant dense<0.000000e+00> : vector<4x16xf32>
    %154 = tpu.matmul %150, %153, %cst_47 {dimension_numbers = #tpu.dot_dimension_numbers<[1], [0], [0], [1], [0, 0, 1, 1], [], []>} : vector<4x16xf32>, vector<16x16xf32>, vector<4x16xf32> -> vector<4x16xf32>
    %c0_48 = arith.constant 0 : index
    %c0_49 = arith.constant 0 : index
    %155 = vector.load %arg11[%c0_48, %c0_49] : memref<1x16xf32, #tpu.memory_space<vmem>>, vector<1x16xf32>
    %156 = vector.broadcast %155 : vector<1x16xf32> to vector<4x16xf32>
    %157 = arith.addf %154, %156 : vector<4x16xf32>
    %158 = math.tanh %157 : vector<4x16xf32>
    %c0_50 = arith.constant 0 : index
    %c0_51 = arith.constant 0 : index
    %159 = vector.load %arg12[%c0_50, %c0_51] : memref<16x1xf32, #tpu.memory_space<vmem>>, vector<16x1xf32>
    %cst_52 = arith.constant dense<0.000000e+00> : vector<4x1xf32>
    %160 = tpu.matmul %158, %159, %cst_52 {dimension_numbers = #tpu.dot_dimension_numbers<[1], [0], [0], [1], [0, 0, 1, 1], [], []>} : vector<4x16xf32>, vector<16x1xf32>, vector<4x1xf32> -> vector<4x1xf32>
    %cst_53 = arith.constant dense<0xFF800000> : vector<1xf32>
    %161 = vector.multi_reduction <maximumf>, %160, %cst_53 [0] : vector<4x1xf32> to vector<1xf32>
    %162 = vector.shape_cast %161 : vector<1xf32> to vector<1x1xf32>
    %163 = vector.broadcast %162 : vector<1x1xf32> to vector<4x1xf32>
    %164 = arith.subf %160, %163 : vector<4x1xf32>
    %165 = math.exp %164 : vector<4x1xf32>
    %cst_54 = arith.constant dense<0.000000e+00> : vector<1xf32>
    %166 = vector.multi_reduction <add>, %165, %cst_54 [0] : vector<4x1xf32> to vector<1xf32>
    %167 = vector.shape_cast %166 : vector<1xf32> to vector<1x1xf32>
    %168 = vector.broadcast %167 : vector<1x1xf32> to vector<4x1xf32>
    %169 = arith.divf %165, %168 : vector<4x1xf32>
    %170 = vector.broadcast %169 : vector<4x1xf32> to vector<4x16xf32>
    %171 = arith.mulf %170, %150 : vector<4x16xf32>
    %cst_55 = arith.constant dense<0.000000e+00> : vector<16xf32>
    %172 = vector.multi_reduction <add>, %171, %cst_55 [0] : vector<4x16xf32> to vector<16xf32>
    %173 = vector.shape_cast %172 : vector<16xf32> to vector<1x16xf32>
    %c0_56 = arith.constant 0 : index
    %c0_57 = arith.constant 0 : index
    %174 = vector.load %arg13[%c0_56, %c0_57] : memref<16x2xf32, #tpu.memory_space<vmem>>, vector<16x2xf32>
    %cst_58 = arith.constant dense<0.000000e+00> : vector<1x2xf32>
    %175 = tpu.matmul %173, %174, %cst_58 {dimension_numbers = #tpu.dot_dimension_numbers<[1], [0], [0], [1], [0, 0, 1, 1], [], []>} : vector<1x16xf32>, vector<16x2xf32>, vector<1x2xf32> -> vector<1x2xf32>
    %c0_59 = arith.constant 0 : index
    %c0_60 = arith.constant 0 : index
    %176 = vector.load %arg14[%c0_59, %c0_60] : memref<1x2xf32, #tpu.memory_space<vmem>>, vector<1x2xf32>
    %177 = arith.addf %175, %176 : vector<1x2xf32>
    %cst_61 = arith.constant dense<0xFF800000> : vector<1xf32>
    %178 = vector.multi_reduction <maximumf>, %177, %cst_61 [1] : vector<1x2xf32> to vector<1xf32>
    %179 = vector.shape_cast %178 : vector<1xf32> to vector<1x1xf32>
    %180 = vector.broadcast %179 : vector<1x1xf32> to vector<1x2xf32>
    %181 = arith.subf %177, %180 : vector<1x2xf32>
    %182 = math.exp %181 : vector<1x2xf32>
    %cst_62 = arith.constant dense<0.000000e+00> : vector<1xf32>
    %183 = vector.multi_reduction <add>, %182, %cst_62 [1] : vector<1x2xf32> to vector<1xf32>
    %184 = vector.shape_cast %183 : vector<1xf32> to vector<1x1xf32>
    %185 = vector.broadcast %184 : vector<1x1xf32> to vector<1x2xf32>
    %186 = arith.divf %182, %185 : vector<1x2xf32>
    %c0_63 = arith.constant 0 : index
    %c0_64 = arith.constant 0 : index
    %187 = vector.load %arg15[%c0_63, %c0_64] : memref<1x2xf32, #tpu.memory_space<vmem>>, vector<1x2xf32>
    tpu.vector_store %arg15[%c0_63, %c0_64], %186 {strides = array<i32>} : memref<1x2xf32, #tpu.memory_space<vmem>>, vector<1x2xf32>,
    return
  }
}

</mosaic_0001>

<bundles_post_ra>
// kernel: tpu_custom_call.1
= control target key start
LH: loop header
LB: loop body
LE: loop exit
PB: predicated region body
PF: predicated region fallthrough
CT: control target
= control target key end

     0   :  { %s2662_s0 = inlined_call_operand.vmem [shape: f32[6,400], index: 0, kind: input, shape index: {}]   ;;  %s2663_s1 = inlined_call_operand.hbm [shape: f32[400,512], index: 1, kind: input, shape index: {}]   ;;  %s2664_s2 = inlined_call_operand.vmem [shape: f32[256,32], index: 2, kind: input, shape index: {}]   ;;  %s2665_s3 = inlined_call_operand.vmem [shape: f32[96,16], index: 3, kind: input, shape index: {}]   ;;  %s2666_s4 = inlined_call_operand.vmem [shape: f32[1,16], index: 4, kind: input, shape index: {}]   ;;  %s2667_s5 = inlined_call_operand.vmem [shape: f32[16,48], index: 5, kind: input, shape index: {}]   ;;  %s2668_s6 = inlined_call_operand.vmem [shape: f32[16,48], index: 6, kind: input, shape index: {}]   ;;  %s2669_s7 = inlined_call_operand.vmem [shape: f32[1,48], index: 7, kind: input, shape index: {}]   ;;  %s2670_s8 = inlined_call_operand.vmem [shape: f32[1,48], index: 8, kind: input, shape index: {}]   ;;  %s2671_s9 = inlined_call_operand.vmem [shape: f32[1,16], index: 9, kind: input, shape index: {}]   ;;  %s2672_s10 = inlined_call_operand.vmem [shape: f32[16,16], index: 10, kind: input, shape index: {}]   ;;  %s2673_s11 = inlined_call_operand.vmem [shape: f32[1,16], index: 11, kind: input, shape index: {}]   ;;  %s2674_s12 = inlined_call_operand.vmem [shape: f32[16,1], index: 12, kind: input, shape index: {}]   ;;  %s2675_s13 = inlined_call_operand.vmem [shape: f32[16,2], index: 13, kind: input, shape index: {}]   ;;  %s2676_s14 = inlined_call_operand.vmem [shape: f32[1,2], index: 14, kind: input, shape index: {}]   ;;  %s2677_s15 = inlined_call_operand.hbm [shape: f32[1,2], index: 15, kind: output, shape index: {0}]   ;;  %s2678_s16 = inlined_call_operand.hbm [shape: f32[4,16], index: 16, kind: output, shape index: {1}]   ;;  %s2679_s17 = inlined_call_operand.hbm [shape: f32[1,16], index: 17, kind: output, shape index: {2}]  }
   0x1   :  { %2682 = sst [smem:[#allocation12_spill]] %s2662_s0 }
   0x2   :  { %2683 = sst [smem:[#allocation13_spill]] %s2663_s1 }
   0x3   :  { %23 = vsyncpa [#allocation3], 0 }
   0x4   :  { %24 = vsyncpa [#allocation4], 0 }
   0x5   :  { %25 = vsyncpa [#allocation7], 0  ;;  %s2228_s24 = smov [#allocation2]   ;;  %s2684_s28 = sld [smem:[#allocation13_spill]] }
   0x6   :  { %s33_s25 = sshll.u32 %s2228_s24, 4  ;;  %s34_s25 = int_to_ptr.vmem [resolvable:$true] %s33_s25 }
   0xb   :  { %s2134_s29 = scalar_lea.hbm %s2684_s28, 25600 }
   0xc   :  { %p2135_p0 = scmp.ne.s32.totalorder %s2684_s28, %s2134_s29  ;;  %p2138_p1 = scmp.lt.u32.totalorder %s2134_s29, %s2684_s28 }
   0xe   :  { %p2140_p2 = pnand %p2138_p1, %p2135_p0 }
  0x10   :  { %2143 = shalt.err (!%p2140_p2)
}
  0x11   :  { %s2144_s1 = scalar_lea.vmem %s34_s25, 25600  ;;  %p2149_p4 = scmp.lt.s32.totalorder %s34_s25, %s34_s25 }
  0x12   :  { %p2145_p3 = scmp.ne.s32.totalorder %s34_s25, %s2144_s1  ;;  %p2150_p5 = scmp.lt.s32.totalorder %s2144_s1, %s2144_s1 }
  0x14   :  { %p2151_p6 = por %p2150_p5, %p2149_p4 }
  0x16   :  { %p2152_p7 = pnand %p2151_p6, %p2145_p3 }
  0x18   :  { %2155 = shalt.err (!%p2152_p7)
}
  0x19   :  { %s2229_s20 = smov 512   ;;  %s2230_s21 = smov 32  }
  0x1a   :  { %39 = dma.hbm_to_vmem [thread:$0]  %s2684_s28, 25600, %s34_s25, [#allocation3], %s2229_s20, %s2229_s20, %s2230_s21  }
  0x1b   :  { %2222 = dma.done.wait [#allocation3], 25600  }
  0x1c   :  { %2223 = vsyncadd [#allocation3], 4294941696  ;;  %v74_v0 = vld [vmem:[#allocation2 + $0x8] sm:$0xff]  ;;  %v76_v2 = vld [vmem:[#allocation2 + $0x18] sm:$0xff]  ;;  %s2685_s26 = sld [smem:[#allocation12_spill]]  ;;  %vm273_vm0 = vcmask 130048  }
  0x1d   :  { %v78_v1 = vld [vmem:[#allocation2 + $0x28] sm:$0xff]  ;;  %v80_v4 = vld [vmem:[#allocation2 + $0x38] sm:$0xff]  ;;  %v73_v5 = vld [vmem:[#allocation2] sm:$0xff]  ;;  %vm2232_vm1 = vmmov 0   ;;  %s2234_s22 = smov 64   ;;  %vm682_vm2 = vcmask 261120  }
  0x1e   :  { %v1804_v3 = vpack.c.bf16 %v78_v1, %v74_v0  ;;  %v77_v6 = vld [vmem:[#allocation2 + $0x20] sm:$0xff]  ;;  %v1904_v7 = vpack.c.bf16 %v80_v4, %v76_v2  ;;  %v75_v9 = vld [vmem:[#allocation2 + $0x10] sm:$0xff]  ;;  %v82_v11 = vld [vmem:[#allocation2 + $0x48] sm:$0xff]  ;;  %vm684_vm3 = vcmask 523264   ;;  %vm705_vm4 = vcmask 785408  }
  0x1f   :  { %v1806_v8 = vpack.c.bf16 %v77_v6, %v73_v5  ;;  %v79_v10 = vld [vmem:[#allocation2 + $0x30] sm:$0xff]  ;;  %v86_v13 = vld [vmem:[#allocation2 + $0x68] sm:$0xff]  ;;  %v84_v14 = vld [vmem:[#allocation2 + $0x58] sm:$0xff]  ;;  %vm1289_vm5 = vcmask 1040384   ;;  %vm1291_vm6 = vcmask 1041408   ;;  %vm1293_vm7 = vcmask 1042432  }
  0x20   :  { %1805 = vmatprep.subr.bf16.mxu0 %v1804_v3  ;;  %v1906_v12 = vpack.c.bf16 %v79_v10, %v75_v9  ;;  %v88_v15 = vld [vmem:[#allocation2 + $0x78] sm:$0xff]  ;;  %1905 = vmatprep.subr.bf16.mxu1 %v1904_v7  ;;  %v1808_v16 = vpack.c.bf16 %v86_v13, %v82_v11  ;;  %v81_v18 = vld [vmem:[#allocation2 + $0x40] sm:$0xff]  ;;  %v83_v20 = vld [vmem:[#allocation2 + $0x50] sm:$0xff]  ;;  %vm1299_vm8 = vcmask 125952   ;;  %vm1464_vm9 = vcmask 3072  }
  0x21   :  { %1807 = vmatpush1.bf16.msra.mxu0 %v1806_v8  ;;  %v1908_v17 = vpack.c.bf16 %v88_v15, %v84_v14  ;;  %v85_v19 = vld [vmem:[#allocation2 + $0x60] sm:$0xff]  ;;  %v87_v22 = vld [vmem:[#allocation2 + $0x70] sm:$0xff]  ;;  %v90_v23 = vld [vmem:[#allocation2 + $0x88] sm:$0xff]  ;;  %vm1490_vm10 = vcmask 257152   ;;  %vm1576_vm11 = vcmask 8192  }
  0x22   :  { %1907 = vmatpush1.bf16.msra.mxu1 %v1906_v12  ;;  %v1810_v21 = vpack.c.bf16 %v85_v19, %v81_v18  ;;  %v94_v24 = vld [vmem:[#allocation2 + $0xa8] sm:$0xff]  ;;  %1809 = vmatprep.subr.bf16.mxu0 %v1808_v16  ;;  %v1910_v25 = vpack.c.bf16 %v87_v22, %v83_v20  ;;  %v92_v27 = vld [vmem:[#allocation2 + $0x98] sm:$0xff]  ;;  %v89_v29 = vld [vmem:[#allocation2 + $0x80] sm:$0xff] }
  0x23   :  { %1909 = vmatprep.subr.bf16.mxu1 %v1908_v17  ;;  %v1812_v26 = vpack.c.bf16 %v94_v24, %v90_v23  ;;  %v96_v28 = vld [vmem:[#allocation2 + $0xb8] sm:$0xff]  ;;  %v93_v31 = vld [vmem:[#allocation2 + $0xa0] sm:$0xff]  ;;  %v91_v32 = vld [vmem:[#allocation2 + $0x90] sm:$0xff] }
  0x24   :  { %v1912_v30 = vpack.c.bf16 %v96_v28, %v92_v27  ;;  %v95_v33 = vld [vmem:[#allocation2 + $0xb0] sm:$0xff]  ;;  %v1814_v34 = vpack.c.bf16 %v93_v31, %v89_v29  ;;  %v98_v35 = vld [vmem:[#allocation2 + $0xc8] sm:$0xff]  ;;  %v100_v37 = vld [vmem:[#allocation2 + $0xd8] sm:$0xff] }
  0x25   :  { %1811 = vmatpush1.bf16.msra.mxu0 %v1810_v21  ;;  %v102_v36 = vld [vmem:[#allocation2 + $0xe8] sm:$0xff]  ;;  %v1914_v38 = vpack.c.bf16 %v95_v33, %v91_v32  ;;  %v104_v40 = vld [vmem:[#allocation2 + $0xf8] sm:$0xff]  ;;  %v97_v41 = vld [vmem:[#allocation2 + $0xc0] sm:$0xff] }
  0x26   :  { %1911 = vmatpush1.bf16.msra.mxu1 %v1910_v25  ;;  %1813 = vmatprep.subr.bf16.mxu0 %v1812_v26  ;;  %v1816_v39 = vpack.c.bf16 %v102_v36, %v98_v35  ;;  %v101_v42 = vld [vmem:[#allocation2 + $0xe0] sm:$0xff]  ;;  %v1916_v43 = vpack.c.bf16 %v104_v40, %v100_v37  ;;  %v99_v44 = vld [vmem:[#allocation2 + $0xd0] sm:$0xff]  ;;  %v106_v46 = vld [vmem:[#allocation2 + $0x108] sm:$0xff] }
  0x27   :  { %1913 = vmatprep.subr.bf16.mxu1 %v1912_v30  ;;  %v103_v45 = vld [vmem:[#allocation2 + $0xf0] sm:$0xff]  ;;  %v110_v47 = vld [vmem:[#allocation2 + $0x128] sm:$0xff]  ;;  %v108_v48 = vld [vmem:[#allocation2 + $0x118] sm:$0xff]  ;;  %v1818_v50 = vpack.c.bf16 %v101_v42, %v97_v41 }
  0x28   :  { %v112_v49 = vld [vmem:[#allocation2 + $0x138] sm:$0xff]  ;;  %v1918_v51 = vpack.c.bf16 %v103_v45, %v99_v44  ;;  %v1820_v52 = vpack.c.bf16 %v110_v47, %v106_v46  ;;  %v105_v53 = vld [vmem:[#allocation2 + $0x100] sm:$0xff]  ;;  %v107_v55 = vld [vmem:[#allocation2 + $0x110] sm:$0xff] }
  0x29   :  { %1815 = vmatpush1.bf16.msra.mxu0 %v1814_v34  ;;  %v109_v54 = vld [vmem:[#allocation2 + $0x120] sm:$0xff]  ;;  %v1920_v56 = vpack.c.bf16 %v112_v49, %v108_v48  ;;  %v111_v57 = vld [vmem:[#allocation2 + $0x130] sm:$0xff]  ;;  %v114_v58 = vld [vmem:[#allocation2 + $0x148] sm:$0xff] }
  0x2a   :  { %1915 = vmatpush1.bf16.msra.mxu1 %v1914_v38  ;;  %1817 = vmatprep.subr.bf16.mxu0 %v1816_v39  ;;  %v118_v59 = vld [vmem:[#allocation2 + $0x168] sm:$0xff]  ;;  %v116_v60 = vld [vmem:[#allocation2 + $0x158] sm:$0xff]  ;;  %v1822_v62 = vpack.c.bf16 %v109_v54, %v105_v53  ;;  %v1922_v63 = vpack.c.bf16 %v111_v57, %v107_v55  ;;  %v113_v1 = vld [vmem:[#allocation2 + $0x140] sm:$0xff] }
  0x2b   :  { %1917 = vmatprep.subr.bf16.mxu1 %v1916_v43  ;;  %v120_v61 = vld [vmem:[#allocation2 + $0x178] sm:$0xff]  ;;  %v1824_v0 = vpack.c.bf16 %v118_v59, %v114_v58  ;;  %v117_v2 = vld [vmem:[#allocation2 + $0x160] sm:$0xff]  ;;  %v115_v3 = vld [vmem:[#allocation2 + $0x150] sm:$0xff] }
  0x2c   :  { %v1924_v4 = vpack.c.bf16 %v120_v61, %v116_v60  ;;  %v119_v5 = vld [vmem:[#allocation2 + $0x170] sm:$0xff]  ;;  %v122_v6 = vld [vmem:[#allocation2 + $0x188] sm:$0xff]  ;;  %v124_v8 = vld [vmem:[#allocation2 + $0x198] sm:$0xff]  ;;  %v1826_v10 = vpack.c.bf16 %v117_v2, %v113_v1 }
  0x2d   :  { %1819 = vmatpush1.bf16.msra.mxu0 %v1818_v50  ;;  %v126_v7 = vld [vmem:[#allocation2 + $0x1a8] sm:$0xff]  ;;  %v128_v9 = vld [vmem:[#allocation2 + $0x1b8] sm:$0xff]  ;;  %v1926_v11 = vpack.c.bf16 %v119_v5, %v115_v3  ;;  %v121_v13 = vld [vmem:[#allocation2 + $0x180] sm:$0xff] }
  0x2e   :  { %1919 = vmatpush1.bf16.msra.mxu1 %v1918_v51  ;;  %1821 = vmatprep.subr.bf16.mxu0 %v1820_v52  ;;  %v1828_v12 = vpack.c.bf16 %v126_v7, %v122_v6  ;;  %v125_v14 = vld [vmem:[#allocation2 + $0x1a0] sm:$0xff]  ;;  %v123_v15 = vld [vmem:[#allocation2 + $0x190] sm:$0xff]  ;;  %v1928_v16 = vpack.c.bf16 %v128_v9, %v124_v8  ;;  %v130_v18 = vld [vmem:[#allocation2 + $0x1c8] sm:$0xff] }
  0x2f   :  { %1921 = vmatprep.subr.bf16.mxu1 %v1920_v56  ;;  %v127_v17 = vld [vmem:[#allocation2 + $0x1b0] sm:$0xff]  ;;  %v134_v19 = vld [vmem:[#allocation2 + $0x1e8] sm:$0xff]  ;;  %v132_v20 = vld [vmem:[#allocation2 + $0x1d8] sm:$0xff]  ;;  %v1830_v22 = vpack.c.bf16 %v125_v14, %v121_v13 }
  0x30   :  { %v136_v21 = vld [vmem:[#allocation2 + $0x1f8] sm:$0xff]  ;;  %v1930_v23 = vpack.c.bf16 %v127_v17, %v123_v15  ;;  %v1832_v24 = vpack.c.bf16 %v134_v19, %v130_v18  ;;  %v129_v25 = vld [vmem:[#allocation2 + $0x1c0] sm:$0xff]  ;;  %v131_v27 = vld [vmem:[#allocation2 + $0x1d0] sm:$0xff] }
  0x31   :  { %1823 = vmatpush1.bf16.msra.mxu0 %v1822_v62  ;;  %v133_v26 = vld [vmem:[#allocation2 + $0x1e0] sm:$0xff]  ;;  %v1932_v28 = vpack.c.bf16 %v136_v21, %v132_v20  ;;  %v135_v29 = vld [vmem:[#allocation2 + $0x1f0] sm:$0xff]  ;;  %v138_v30 = vld [vmem:[#allocation2 + $0x208] sm:$0xff] }
  0x32   :  { %1923 = vmatpush1.bf16.msra.mxu1 %v1922_v63  ;;  %1825 = vmatprep.subr.bf16.mxu0 %v1824_v0  ;;  %v142_v31 = vld [vmem:[#allocation2 + $0x228] sm:$0xff]  ;;  %v140_v32 = vld [vmem:[#allocation2 + $0x218] sm:$0xff]  ;;  %v1834_v34 = vpack.c.bf16 %v133_v26, %v129_v25  ;;  %v1934_v35 = vpack.c.bf16 %v135_v29, %v131_v27  ;;  %v137_v37 = vld [vmem:[#allocation2 + $0x200] sm:$0xff] }
  0x33   :  { %1925 = vmatprep.subr.bf16.mxu1 %v1924_v4  ;;  %v144_v33 = vld [vmem:[#allocation2 + $0x238] sm:$0xff]  ;;  %v1836_v36 = vpack.c.bf16 %v142_v31, %v138_v30  ;;  %v141_v38 = vld [vmem:[#allocation2 + $0x220] sm:$0xff]  ;;  %v139_v39 = vld [vmem:[#allocation2 + $0x210] sm:$0xff] }
  0x34   :  { %v1936_v40 = vpack.c.bf16 %v144_v33, %v140_v32  ;;  %v143_v41 = vld [vmem:[#allocation2 + $0x230] sm:$0xff]  ;;  %v146_v42 = vld [vmem:[#allocation2 + $0x248] sm:$0xff]  ;;  %v148_v44 = vld [vmem:[#allocation2 + $0x258] sm:$0xff]  ;;  %v1838_v46 = vpack.c.bf16 %v141_v38, %v137_v37 }
  0x35   :  { %1827 = vmatpush1.bf16.msra.mxu0 %v1826_v10  ;;  %v150_v43 = vld [vmem:[#allocation2 + $0x268] sm:$0xff]  ;;  %v152_v45 = vld [vmem:[#allocation2 + $0x278] sm:$0xff]  ;;  %v1938_v47 = vpack.c.bf16 %v143_v41, %v139_v39  ;;  %v145_v49 = vld [vmem:[#allocation2 + $0x240] sm:$0xff] }
  0x36   :  { %1927 = vmatpush1.bf16.msra.mxu1 %v1926_v11  ;;  %1829 = vmatprep.subr.bf16.mxu0 %v1828_v12  ;;  %v1840_v48 = vpack.c.bf16 %v150_v43, %v146_v42  ;;  %v149_v50 = vld [vmem:[#allocation2 + $0x260] sm:$0xff]  ;;  %v147_v51 = vld [vmem:[#allocation2 + $0x250] sm:$0xff]  ;;  %v1940_v52 = vpack.c.bf16 %v152_v45, %v148_v44  ;;  %v154_v54 = vld [vmem:[#allocation2 + $0x288] sm:$0xff] }
  0x37   :  { %1929 = vmatprep.subr.bf16.mxu1 %v1928_v16  ;;  %v151_v53 = vld [vmem:[#allocation2 + $0x270] sm:$0xff]  ;;  %v158_v55 = vld [vmem:[#allocation2 + $0x2a8] sm:$0xff]  ;;  %v156_v56 = vld [vmem:[#allocation2 + $0x298] sm:$0xff]  ;;  %v1842_v58 = vpack.c.bf16 %v149_v50, %v145_v49 }
  0x38   :  { %v160_v57 = vld [vmem:[#allocation2 + $0x2b8] sm:$0xff]  ;;  %v1942_v59 = vpack.c.bf16 %v151_v53, %v147_v51  ;;  %v1844_v60 = vpack.c.bf16 %v158_v55, %v154_v54  ;;  %v153_v61 = vld [vmem:[#allocation2 + $0x280] sm:$0xff]  ;;  %v155_v63 = vld [vmem:[#allocation2 + $0x290] sm:$0xff] }
  0x39   :  { %1831 = vmatpush1.bf16.msra.mxu0 %v1830_v22  ;;  %v157_v62 = vld [vmem:[#allocation2 + $0x2a0] sm:$0xff]  ;;  %v1944_v0 = vpack.c.bf16 %v160_v57, %v156_v56  ;;  %v159_v1 = vld [vmem:[#allocation2 + $0x2b0] sm:$0xff]  ;;  %v162_v2 = vld [vmem:[#allocation2 + $0x2c8] sm:$0xff] }
  0x3a   :  { %1931 = vmatpush1.bf16.msra.mxu1 %v1930_v23  ;;  %1833 = vmatprep.subr.bf16.mxu0 %v1832_v24  ;;  %v166_v3 = vld [vmem:[#allocation2 + $0x2e8] sm:$0xff]  ;;  %v164_v4 = vld [vmem:[#allocation2 + $0x2d8] sm:$0xff]  ;;  %v1846_v6 = vpack.c.bf16 %v157_v62, %v153_v61  ;;  %v161_v7 = vld [vmem:[#allocation2 + $0x2c0] sm:$0xff]  ;;  %v1946_v8 = vpack.c.bf16 %v159_v1, %v155_v63 }
  0x3b   :  { %1933 = vmatprep.subr.bf16.mxu1 %v1932_v28  ;;  %v168_v5 = vld [vmem:[#allocation2 + $0x2f8] sm:$0xff]  ;;  %v1848_v9 = vpack.c.bf16 %v166_v3, %v162_v2  ;;  %v165_v10 = vld [vmem:[#allocation2 + $0x2e0] sm:$0xff]  ;;  %v163_v11 = vld [vmem:[#allocation2 + $0x2d0] sm:$0xff] }
  0x3c   :  { %v167_v12 = vld [vmem:[#allocation2 + $0x2f0] sm:$0xff]  ;;  %v1948_v13 = vpack.c.bf16 %v168_v5, %v164_v4  ;;  %v170_v14 = vld [vmem:[#allocation2 + $0x308] sm:$0xff]  ;;  %v172_v17 = vld [vmem:[#allocation2 + $0x318] sm:$0xff]  ;;  %v1850_v19 = vpack.c.bf16 %v165_v10, %v161_v7 }
  0x3d   :  { %1835 = vmatpush1.bf16.msra.mxu0 %v1834_v34  ;;  %v174_v15 = vld [vmem:[#allocation2 + $0x328] sm:$0xff]  ;;  %v176_v18 = vld [vmem:[#allocation2 + $0x338] sm:$0xff]  ;;  %v1950_v20 = vpack.c.bf16 %v167_v12, %v163_v11  ;;  %v169_v22 = vld [vmem:[#allocation2 + $0x300] sm:$0xff] }
  0x3e   :  { %1935 = vmatpush1.bf16.msra.mxu1 %v1934_v35  ;;  %1837 = vmatprep.subr.bf16.mxu0 %v1836_v36  ;;  %v70_v16 = vld [vmem:[%s2685_s26 + $0x8] sm:$0x3f]  ;;  %v1852_v21 = vpack.c.bf16 %v174_v15, %v170_v14  ;;  %v173_v23 = vld [vmem:[#allocation2 + $0x320] sm:$0xff]  ;;  %v171_v24 = vld [vmem:[#allocation2 + $0x310] sm:$0xff]  ;;  %v1952_v25 = vpack.c.bf16 %v176_v18, %v172_v17 }
  0x3f   :  { %1937 = vmatprep.subr.bf16.mxu1 %v1936_v40  ;;  %341 = vmatprep.mubr.f32.mxu0 %v70_v16  ;;  %v175_v26 = vld [vmem:[#allocation2 + $0x330] sm:$0xff]  ;;  %v178_v27 = vld [vmem:[#allocation2 + $0x348] sm:$0xff]  ;;  %v180_v29 = vld [vmem:[#allocation2 + $0x358] sm:$0xff]  ;;  %v1854_v31 = vpack.c.bf16 %v173_v23, %v169_v22 }
  0x40   :  { %483 = vmatprep.mubr.f32.mxu1 %v70_v16  ;;  %v182_v28 = vld [vmem:[#allocation2 + $0x368] sm:$0xff]  ;;  %v184_v30 = vld [vmem:[#allocation2 + $0x378] sm:$0xff]  ;;  %v1954_v32 = vpack.c.bf16 %v175_v26, %v171_v24  ;;  %v177_v34 = vld [vmem:[#allocation2 + $0x340] sm:$0xff] }
  0x41   :  { %1839 = vmatpush1.bf16.msra.mxu0 %v1838_v46  ;;  %v1856_v33 = vpack.c.bf16 %v182_v28, %v178_v27  ;;  %v181_v35 = vld [vmem:[#allocation2 + $0x360] sm:$0xff]  ;;  %v179_v36 = vld [vmem:[#allocation2 + $0x350] sm:$0xff]  ;;  %v1956_v37 = vpack.c.bf16 %v184_v30, %v180_v29  ;;  %v186_v39 = vld [vmem:[#allocation2 + $0x388] sm:$0xff] }
  0x42   :  { %1939 = vmatpush1.bf16.msra.mxu1 %v1938_v47  ;;  %1841 = vmatprep.subr.bf16.mxu0 %v1840_v48  ;;  %v183_v38 = vld [vmem:[#allocation2 + $0x370] sm:$0xff]  ;;  %v190_v40 = vld [vmem:[#allocation2 + $0x3a8] sm:$0xff]  ;;  %v188_v41 = vld [vmem:[#allocation2 + $0x398] sm:$0xff]  ;;  %v1858_v43 = vpack.c.bf16 %v181_v35, %v177_v34 }
  0x43   :  { %1941 = vmatprep.subr.bf16.mxu1 %v1940_v52  ;;  %v192_v42 = vld [vmem:[#allocation2 + $0x3b8] sm:$0xff]  ;;  %v1958_v44 = vpack.c.bf16 %v183_v38, %v179_v36  ;;  %v1860_v45 = vpack.c.bf16 %v190_v40, %v186_v39  ;;  %v185_v46 = vld [vmem:[#allocation2 + $0x380] sm:$0xff]  ;;  %v187_v48 = vld [vmem:[#allocation2 + $0x390] sm:$0xff] }
  0x44   :  { %v189_v47 = vld [vmem:[#allocation2 + $0x3a0] sm:$0xff]  ;;  %v1960_v49 = vpack.c.bf16 %v192_v42, %v188_v41  ;;  %v191_v50 = vld [vmem:[#allocation2 + $0x3b0] sm:$0xff]  ;;  %v194_v51 = vld [vmem:[#allocation2 + $0x3c8] sm:$0xff] }
  0x45   :  { %1843 = vmatpush1.bf16.msra.mxu0 %v1842_v58  ;;  %v198_v52 = vld [vmem:[#allocation2 + $0x3e8] sm:$0xff]  ;;  %v196_v53 = vld [vmem:[#allocation2 + $0x3d8] sm:$0xff]  ;;  %v1862_v55 = vpack.c.bf16 %v189_v47, %v185_v46  ;;  %v1962_v56 = vpack.c.bf16 %v191_v50, %v187_v48  ;;  %v193_v58 = vld [vmem:[#allocation2 + $0x3c0] sm:$0xff] }
  0x46   :  { %1943 = vmatpush1.bf16.msra.mxu1 %v1942_v59  ;;  %1845 = vmatprep.subr.bf16.mxu0 %v1844_v60  ;;  %v200_v54 = vld [vmem:[#allocation2 + $0x3f8] sm:$0xff]  ;;  %v1864_v57 = vpack.c.bf16 %v198_v52, %v194_v51  ;;  %v197_v59 = vld [vmem:[#allocation2 + $0x3e0] sm:$0xff]  ;;  %v195_v60 = vld [vmem:[#allocation2 + $0x3d0] sm:$0xff] }
  0x47   :  { %1945 = vmatprep.subr.bf16.mxu1 %v1944_v0  ;;  %v1964_v61 = vpack.c.bf16 %v200_v54, %v196_v53  ;;  %v199_v62 = vld [vmem:[#allocation2 + $0x3f0] sm:$0xff]  ;;  %v202_v63 = vld [vmem:[#allocation2 + $0x408] sm:$0xff]  ;;  %v204_v1 = vld [vmem:[#allocation2 + $0x418] sm:$0xff]  ;;  %v1866_v3 = vpack.c.bf16 %v197_v59, %v193_v58 }
  0x48   :  { %v206_v0 = vld [vmem:[#allocation2 + $0x428] sm:$0xff]  ;;  %v208_v2 = vld [vmem:[#allocation2 + $0x438] sm:$0xff]  ;;  %v1966_v4 = vpack.c.bf16 %v199_v62, %v195_v60  ;;  %v205_v7 = vld [vmem:[#allocation2 + $0x420] sm:$0xff] }
  0x49   :  { %1847 = vmatpush1.bf16.msra.mxu0 %v1846_v6  ;;  %v1868_v5 = vpack.c.bf16 %v206_v0, %v202_v63  ;;  %v201_v6 = vld [vmem:[#allocation2 + $0x400] sm:$0xff]  ;;  %v207_v10 = vld [vmem:[#allocation2 + $0x430] sm:$0xff]  ;;  %v210_v11 = vld [vmem:[#allocation2 + $0x448] sm:$0xff] }
  0x4a   :  { %1947 = vmatpush1.bf16.msra.mxu1 %v1946_v8  ;;  %1849 = vmatprep.subr.bf16.mxu0 %v1848_v9  ;;  %v203_v8 = vld [vmem:[#allocation2 + $0x410] sm:$0xff]  ;;  %v1968_v9 = vpack.c.bf16 %v208_v2, %v204_v1  ;;  %v214_v12 = vld [vmem:[#allocation2 + $0x468] sm:$0xff]  ;;  %v216_v14 = vld [vmem:[#allocation2 + $0x478] sm:$0xff]  ;;  %v1870_v16 = vpack.c.bf16 %v205_v7, %v201_v6 }
  0x4b   :  { %1949 = vmatprep.subr.bf16.mxu1 %v1948_v13  ;;  %v212_v13 = vld [vmem:[#allocation2 + $0x458] sm:$0xff]  ;;  %v69_v15 = vld [vmem:[%s2685_s26] sm:$0x3f]  ;;  %v1970_v17 = vpack.c.bf16 %v207_v10, %v203_v8  ;;  %v1872_v18 = vpack.c.bf16 %v214_v12, %v210_v11  ;;  %v215_v23 = vld [vmem:[#allocation2 + $0x470] sm:$0xff] }
  0x4c   :  { %v1972_v22 = vpack.c.bf16 %v216_v14, %v212_v13  ;;  %v218_v24 = vld [vmem:[#allocation2 + $0x488] sm:$0xff]  ;;  %v220_v26 = vld [vmem:[#allocation2 + $0x498] sm:$0xff]  ;;  %v219_v34 = vld [vmem:[#allocation2 + $0x490] sm:$0xff] }
  0x4d   :  { %1851 = vmatpush1.bf16.msra.mxu0 %v1850_v19  ;;  %v209_v19 = vld [vmem:[#allocation2 + $0x440] sm:$0xff]  ;;  %v224_v27 = vld [vmem:[#allocation2 + $0x4b8] sm:$0xff]  ;;  %v223_v36 = vld [vmem:[#allocation2 + $0x4b0] sm:$0xff] }
  0x4e   :  { %1951 = vmatpush1.bf16.msra.mxu1 %v1950_v20  ;;  %1853 = vmatprep.subr.bf16.mxu0 %v1852_v21  ;;  %v213_v20 = vld [vmem:[#allocation2 + $0x460] sm:$0xff]  ;;  %v211_v21 = vld [vmem:[#allocation2 + $0x450] sm:$0xff]  ;;  %v72_v28 = vld [vmem:[%s2685_s26 + $0x18] sm:$0x3f]  ;;  %v1976_v35 = vpack.c.bf16 %v224_v27, %v220_v26  ;;  %v1978_v42 = vpack.c.bf16 %v223_v36, %v219_v34 }
  0x4f   :  { %1953 = vmatprep.subr.bf16.mxu1 %v1952_v25  ;;  %v222_v25 = vld [vmem:[#allocation2 + $0x4a8] sm:$0xff]  ;;  %v1874_v29 = vpack.c.bf16 %v213_v20, %v209_v19  ;;  %v1974_v30 = vpack.c.bf16 %v215_v23, %v211_v21  ;;  %v228_v39 = vld [vmem:[#allocation2 + $0x4d8] sm:$0xff]  ;;  %v227_v46 = vld [vmem:[#allocation2 + $0x4d0] sm:$0xff] }
  0x50   :  { %v230_v38 = vld [vmem:[#allocation2 + $0x4e8] sm:$0xff]  ;;  %v232_v40 = vld [vmem:[#allocation2 + $0x4f8] sm:$0xff]  ;;  %v231_v48 = vld [vmem:[#allocation2 + $0x4f0] sm:$0xff] }
  0x51   :  { %1855 = vmatpush1.bf16.msra.mxu0 %v1854_v31  ;;  %v1876_v31 = vpack.c.bf16 %v222_v25, %v218_v24  ;;  %v1980_v47 = vpack.c.bf16 %v232_v40, %v228_v39  ;;  %v238_v50 = vld [vmem:[#allocation2 + $0x528] sm:$0xff]  ;;  %v236_v51 = vld [vmem:[#allocation2 + $0x518] sm:$0xff]  ;;  %v1982_v54 = vpack.c.bf16 %v231_v48, %v227_v46  ;;  %v235_v58 = vld [vmem:[#allocation2 + $0x510] sm:$0xff] }
  0x52   :  { %1955 = vmatpush1.bf16.msra.mxu1 %v1954_v32  ;;  %1857 = vmatprep.subr.bf16.mxu0 %v1856_v33  ;;  %v217_v32 = vld [vmem:[#allocation2 + $0x480] sm:$0xff]  ;;  %v240_v52 = vld [vmem:[#allocation2 + $0x538] sm:$0xff]  ;;  %v239_v60 = vld [vmem:[#allocation2 + $0x530] sm:$0xff] }
  0x53   :  { %1957 = vmatprep.subr.bf16.mxu1 %v1956_v37  ;;  %v221_v33 = vld [vmem:[#allocation2 + $0x4a0] sm:$0xff]  ;;  %v226_v37 = vld [vmem:[#allocation2 + $0x4c8] sm:$0xff]  ;;  %v1984_v59 = vpack.c.bf16 %v240_v52, %v236_v51  ;;  %v244_v63 = vld [vmem:[#allocation2 + $0x558] sm:$0xff]  ;;  %v1986_v2 = vpack.c.bf16 %v239_v60, %v235_v58 }
  0x54   :  { %v1878_v41 = vpack.c.bf16 %v221_v33, %v217_v32  ;;  %v246_v62 = vld [vmem:[#allocation2 + $0x568] sm:$0xff]  ;;  %v248_v0 = vld [vmem:[#allocation2 + $0x578] sm:$0xff]  ;;  %v243_v6 = vld [vmem:[#allocation2 + $0x550] sm:$0xff] }
  0x55   :  { %1859 = vmatpush1.bf16.msra.mxu0 %v1858_v43  ;;  %v1880_v43 = vpack.c.bf16 %v230_v38, %v226_v37  ;;  %v1988_v7 = vpack.c.bf16 %v248_v0, %v244_v63  ;;  %v247_v8 = vld [vmem:[#allocation2 + $0x570] sm:$0xff]  ;;  %v254_v10 = vld [vmem:[#allocation2 + $0x5a8] sm:$0xff]  ;;  %v252_v11 = vld [vmem:[#allocation2 + $0x598] sm:$0xff] }
  0x56   :  { %1959 = vmatpush1.bf16.msra.mxu1 %v1958_v44  ;;  %1861 = vmatprep.subr.bf16.mxu0 %v1860_v45  ;;  %v225_v44 = vld [vmem:[#allocation2 + $0x4c0] sm:$0xff]  ;;  %v256_v12 = vld [vmem:[#allocation2 + $0x5b8] sm:$0xff]  ;;  %v1990_v14 = vpack.c.bf16 %v247_v8, %v243_v6  ;;  %v255_v20 = vld [vmem:[#allocation2 + $0x5b0] sm:$0xff] }
  0x57   :  { %1961 = vmatprep.subr.bf16.mxu1 %v1960_v49  ;;  %v229_v45 = vld [vmem:[#allocation2 + $0x4e0] sm:$0xff]  ;;  %v234_v49 = vld [vmem:[#allocation2 + $0x508] sm:$0xff]  ;;  %v1992_v19 = vpack.c.bf16 %v256_v12, %v252_v11  ;;  %v260_v23 = vld [vmem:[#allocation2 + $0x5d8] sm:$0xff] }
  0x58   :  { %v1882_v53 = vpack.c.bf16 %v229_v45, %v225_v44  ;;  %v258_v21 = vld [vmem:[#allocation2 + $0x5c8] sm:$0xff]  ;;  %v264_v24 = vld [vmem:[#allocation2 + $0x5f8] sm:$0xff]  ;;  %v263_v32 = vld [vmem:[#allocation2 + $0x5f0] sm:$0xff] }
  0x59   :  { %1863 = vmatpush1.bf16.msra.mxu0 %v1862_v55  ;;  %v1884_v55 = vpack.c.bf16 %v238_v50, %v234_v49  ;;  %v266_v33 = vld [vmem:[#allocation2 + $0x608] sm:$0xff]  ;;  %v272_v36 = vld [vmem:[#allocation2 + $0x638] sm:$0xff]  ;;  %v265_v40 = vld [vmem:[#allocation2 + $0x600] sm:$0xff] }
  0x5a   :  { %1963 = vmatpush1.bf16.msra.mxu1 %v1962_v56  ;;  %1865 = vmatprep.subr.bf16.mxu0 %v1864_v57  ;;  %v233_v56 = vld [vmem:[#allocation2 + $0x500] sm:$0xff]  ;;  %v270_v34 = vld [vmem:[#allocation2 + $0x628] sm:$0xff]  ;;  %v271_v44 = vld [vmem:[#allocation2 + $0x630] sm:$0xff] }
  0x5b   :  { %1965 = vmatprep.subr.bf16.mxu1 %v1964_v61  ;;  %v237_v57 = vld [vmem:[#allocation2 + $0x520] sm:$0xff]  ;;  %v242_v61 = vld [vmem:[#allocation2 + $0x548] sm:$0xff]  ;;  %v1900_v39 = vpack.c.bf16 %v270_v34, %v266_v33  ;;  %v585_v52 = vld [vmem:[%s2664_s2 + $0x90] sm:$0xff] }
  0x5c   :  { %v1886_v1 = vpack.c.bf16 %v237_v57, %v233_v56  ;;  %v583_v45 = vld [vmem:[%s2664_s2 + $0x80] sm:$0xff]  ;;  %v584_v46 = vld [vmem:[%s2664_s2 + $0x88] sm:$0xff]  ;;  %v569_v57 = vld [vmem:[%s2664_s2 + $0x10] sm:$0xff] }
  0x5d   :  { %1867 = vmatpush1.bf16.msra.mxu0 %v1866_v3  ;;  %v1888_v3 = vpack.c.bf16 %v246_v62, %v242_v61  ;;  %v2004_v49 = vpack.c.bf16 %v584_v46, %v583_v45  ;;  %v567_v50 = vld [vmem:[%s2664_s2] sm:$0xff]  ;;  %v568_v51 = vld [vmem:[%s2664_s2 + $0x8] sm:$0xff]  ;;  %v570_v58 = vld [vmem:[%s2664_s2 + $0x18] sm:$0xff]  ;;  %v2231_v45 = vmov 0.0|0.0  }
  0x5e   :  { %1967 = vmatpush1.bf16.msra.mxu1 %v1966_v4  ;;  %1869 = vmatprep.subr.bf16.mxu0 %v1868_v5  ;;  %v241_v4 = vld [vmem:[#allocation2 + $0x540] sm:$0xff]  ;;  %v588_v60 = vld [vmem:[%s2664_s2 + $0xa8] sm:$0xff]  ;;  %v2010_v61 = vpack.c.bf16 %v570_v58, %v569_v57  ;;  %v574_v6 = vld [vmem:[%s2664_s2 + $0x38] sm:$0xff] }
  0x5f   :  { %1969 = vmatprep.subr.bf16.mxu1 %v1968_v9  ;;  %v245_v5 = vld [vmem:[#allocation2 + $0x560] sm:$0xff]  ;;  %v250_v9 = vld [vmem:[#allocation2 + $0x588] sm:$0xff] }
  0x60   :  { %342 = vmatmul.mubr.f32.vlgmr.msra.gmra.mrb[0].mxu0 %v69_v15  ;;  %v1890_v13 = vpack.c.bf16 %v245_v5, %v241_v4  ;;  %v571_v63 = vld [vmem:[%s2664_s2 + $0x20] sm:$0xff]  ;;  %v572_v0 = vld [vmem:[%s2664_s2 + $0x28] sm:$0xff]  ;;  %v573_v5 = vld [vmem:[%s2664_s2 + $0x30] sm:$0xff] }
  0x61   :  { %1871 = vmatpush1.bf16.msra.mxu0 %v1870_v16  ;;  %484 = vmatmul.mubr.f32.vlgmr.msra.gmra.mrb[0].mxu1 %v69_v15  ;;  %v1892_v15 = vpack.c.bf16 %v254_v10, %v250_v9  ;;  %v249_v16 = vld [vmem:[#allocation2 + $0x580] sm:$0xff]  ;;  %v592_v8 = vld [vmem:[%s2664_s2 + $0xc8] sm:$0xff]  ;;  %v2018_v9 = vpack.c.bf16 %v574_v6, %v573_v5 }
  0x62   :  { %1971 = vmatpush1.bf16.msra.mxu1 %v1970_v17  ;;  %1873 = vmatprep.subr.bf16.mxu0 %v1872_v18  ;;  %v253_v17 = vld [vmem:[#allocation2 + $0x5a0] sm:$0xff]  ;;  %v251_v18 = vld [vmem:[#allocation2 + $0x590] sm:$0xff]  ;;  %v576_v12 = vld [vmem:[%s2664_s2 + $0x48] sm:$0xff] }
  0x63   :  { %1973 = vmatprep.subr.bf16.mxu1 %v1972_v22  ;;  %1631 = vmatprep.mubr.msk.f32.mxu0 %vm273_vm0, %v72_v28  ;;  %v262_v22 = vld [vmem:[#allocation2 + $0x5e8] sm:$0xff]  ;;  %v1894_v25 = vpack.c.bf16 %v253_v17, %v249_v16  ;;  %v1994_v26 = vpack.c.bf16 %v255_v20, %v251_v18  ;;  %v575_v11 = vld [vmem:[%s2664_s2 + $0x40] sm:$0xff]  ;;  %v577_v17 = vld [vmem:[%s2664_s2 + $0x50] sm:$0xff] }
  0x64   :  { %1632 = vmatprep.mubr.msk.f32.mxu1 %vm273_vm0, %v72_v28  ;;  %v1896_v27 = vpack.c.bf16 %v262_v22, %v258_v21  ;;  %v257_v28 = vld [vmem:[#allocation2 + $0x5c0] sm:$0xff]  ;;  %v578_v18 = vld [vmem:[%s2664_s2 + $0x58] sm:$0xff]  ;;  %v596_v20 = vld [vmem:[%s2664_s2 + $0xe8] sm:$0xff] }
  0x65   :  { %1875 = vmatpush1.bf16.msra.mxu0 %v1874_v29  ;;  %v261_v29 = vld [vmem:[#allocation2 + $0x5e0] sm:$0xff]  ;;  %v2026_v21 = vpack.c.bf16 %v578_v18, %v577_v17 }
  0x66   :  { %1975 = vmatpush1.bf16.msra.mxu1 %v1974_v30  ;;  %1877 = vmatprep.subr.bf16.mxu0 %v1876_v31  ;;  %v259_v30 = vld [vmem:[#allocation2 + $0x5d0] sm:$0xff]  ;;  %v1996_v31 = vpack.c.bf16 %v264_v24, %v260_v23  ;;  %v1898_v37 = vpack.c.bf16 %v261_v29, %v257_v28  ;;  %v579_v23 = vld [vmem:[%s2664_s2 + $0x60] sm:$0xff]  ;;  %v580_v24 = vld [vmem:[%s2664_s2 + $0x68] sm:$0xff] }
  0x67   :  { %1977 = vmatprep.subr.bf16.mxu1 %v1976_v35  ;;  %v268_v35 = vld [vmem:[#allocation2 + $0x618] sm:$0xff]  ;;  %v1998_v38 = vpack.c.bf16 %v263_v32, %v259_v30  ;;  %v581_v29 = vld [vmem:[%s2664_s2 + $0x70] sm:$0xff]  ;;  %v1633_v17 = vld [vmem:[%s2666_s4] ss:$0 sm:$0xff] }
  0x68   :  { %v582_v30 = vld [vmem:[%s2664_s2 + $0x78] sm:$0xff] }
  0x69   :  { %1879 = vmatpush1.bf16.msra.mxu0 %v1878_v41  ;;  %v269_v41 = vld [vmem:[#allocation2 + $0x620] sm:$0xff] }
  0x6a   :  { %1979 = vmatpush1.bf16.msra.mxu1 %v1978_v42  ;;  %1881 = vmatprep.subr.bf16.mxu0 %v1880_v43  ;;  %v267_v42 = vld [vmem:[#allocation2 + $0x610] sm:$0xff]  ;;  %v2000_v43 = vpack.c.bf16 %v272_v36, %v268_v35 }
  0x6b   :  { %1981 = vmatprep.subr.bf16.mxu1 %v1980_v47  ;;  %v1902_v47 = vpack.c.bf16 %v269_v41, %v265_v40  ;;  %v2002_v48 = vpack.c.bf16 %v271_v44, %v267_v42  ;;  %v686_v42 = vld [vmem:[%s2665_s3] sm:$0xff]  ;;  %v688_v44 = vld [vmem:[%s2665_s3 + $0x10] sm:$0xff] }
  0x6d   :  { %1883 = vmatpush1.bf16.msra.mxu0 %v1882_v53  ;;  %v586_v53 = vld [vmem:[%s2664_s2 + $0x98] sm:$0xff] }
  0x6e   :  { %1983 = vmatpush1.bf16.msra.mxu1 %v1982_v54  ;;  %1885 = vmatprep.subr.bf16.mxu0 %v1884_v55  ;;  %v71_v54 = vld [vmem:[%s2685_s26 + $0x10] sm:$0x3f]  ;;  %v2006_v55 = vpack.c.bf16 %v568_v51, %v567_v50  ;;  %v2008_v56 = vpack.c.bf16 %v586_v53, %v585_v52  ;;  %v691_v50 = vld [vmem:[%s2665_s3 + $0x28] sm:$0xff]  ;;  %v693_v53 = vld [vmem:[%s2665_s3 + $0x38] sm:$0xff] }
  0x6f   :  { %1985 = vmatprep.subr.bf16.mxu1 %v1984_v59  ;;  %v587_v59 = vld [vmem:[%s2664_s2 + $0xa0] sm:$0xff]  ;;  %v692_v52 = vld [vmem:[%s2665_s3 + $0x30] sm:$0xff] }
  0x70   :  { %v2012_v62 = vpack.c.bf16 %v588_v60, %v587_v59 }
  0x71   :  { %1887 = vmatpush1.bf16.msra.mxu0 %v1886_v1  ;;  %v589_v1 = vld [vmem:[%s2664_s2 + $0xb0] sm:$0xff] }
  0x72   :  { %1987 = vmatpush1.bf16.msra.mxu1 %v1986_v2  ;;  %1889 = vmatprep.subr.bf16.mxu0 %v1888_v3  ;;  %v590_v2 = vld [vmem:[%s2664_s2 + $0xb8] sm:$0xff]  ;;  %v2014_v3 = vpack.c.bf16 %v572_v0, %v571_v63  ;;  %v696_v63 = vld [vmem:[%s2665_s3 + $0x50] sm:$0xff] }
  0x73   :  { %1989 = vmatprep.subr.bf16.mxu1 %v1988_v7  ;;  %v2016_v4 = vpack.c.bf16 %v590_v2, %v589_v1  ;;  %v591_v7 = vld [vmem:[%s2664_s2 + $0xc0] sm:$0xff]  ;;  %v697_v0 = vld [vmem:[%s2665_s3 + $0x58] sm:$0xff]  ;;  %v2233_v2 = vmov 0.0  }
  0x74   :  { %v2020_v10 = vpack.c.bf16 %v592_v8, %v591_v7  ;;  %v2052_v1 = vpack.c.bf16 %v697_v0, %v696_v63 }
  0x75   :  { %1891 = vmatpush1.bf16.msra.mxu0 %v1890_v13  ;;  %v593_v13 = vld [vmem:[%s2664_s2 + $0xd0] sm:$0xff] }
  0x76   :  { %1991 = vmatpush1.bf16.msra.mxu1 %v1990_v14  ;;  %1893 = vmatprep.subr.bf16.mxu0 %v1892_v15  ;;  %v594_v14 = vld [vmem:[%s2664_s2 + $0xd8] sm:$0xff]  ;;  %v2022_v15 = vpack.c.bf16 %v576_v12, %v575_v11  ;;  %v780_v11 = vld [vmem:[%s2667_s5] sm:$0xff]  ;;  %v781_v12 = vld [vmem:[%s2667_s5 + $0x8] sm:$0xff] }
  0x77   :  { %1993 = vmatprep.subr.bf16.mxu1 %v1992_v19  ;;  %v2024_v16 = vpack.c.bf16 %v594_v14, %v593_v13  ;;  %v595_v19 = vld [vmem:[%s2664_s2 + $0xe0] sm:$0xff]  ;;  %v2055_v13 = vpack.c.bf16 %v781_v12, %v780_v11 }
  0x78   :  { %v2028_v22 = vpack.c.bf16 %v596_v20, %v595_v19  ;;  %v862_v14 = vld [vmem:[%s2668_s6] sm:$0xff] }
  0x79   :  { %1895 = vmatpush1.bf16.msra.mxu0 %v1894_v25  ;;  %v2030_v25 = vpack.c.bf16 %v580_v24, %v579_v23 }
  0x7a   :  { %1995 = vmatpush1.bf16.msra.mxu1 %v1994_v26  ;;  %1897 = vmatprep.subr.bf16.mxu0 %v1896_v27  ;;  %v597_v26 = vld [vmem:[%s2664_s2 + $0xf0] sm:$0xff]  ;;  %v598_v27 = vld [vmem:[%s2664_s2 + $0xf8] sm:$0xff] }
  0x7b   :  { %1997 = vmatprep.subr.bf16.mxu1 %v1996_v31  ;;  %v2032_v28 = vpack.c.bf16 %v598_v27, %v597_v26  ;;  %v2034_v31 = vpack.c.bf16 %v582_v30, %v581_v29  ;;  %v1635_v29 = vld [vmem:[%s2669_s7] ss:$0 sm:$0xff]  ;;  %s2237_s7 = smov 112  }
  0x7d   :  { %1899 = vmatpush1.bf16.msra.mxu0 %v1898_v37 }
  0x7e   :  { %1999 = vmatpush1.bf16.msra.mxu1 %v1998_v38  ;;  %1901 = vmatprep.subr.bf16.mxu0 %v1900_v39 }
  0x7f   :  { %2001 = vmatprep.subr.bf16.mxu1 %v2000_v43  ;;  %v687_v43 = vld [vmem:[%s2665_s3 + $0x8] sm:$0xff] }
  0x80   :  { %v2037_v46 = vpack.c.bf16 %v687_v43, %v686_v42 }
  0x81   :  { %1903 = vmatpush1.bf16.msra.mxu0 %v1902_v47  ;;  %v689_v47 = vld [vmem:[%s2665_s3 + $0x18] sm:$0xff] }
  0x82   :  { %2003 = vmatpush1.bf16.msra.mxu1 %v2002_v48  ;;  %2005 = vmatprep.subr.bf16.mxu0 %v2004_v49  ;;  %v2040_v48 = vpack.c.bf16 %v689_v47, %v688_v44  ;;  %v690_v49 = vld [vmem:[%s2665_s3 + $0x20] sm:$0xff] }
  0x83   :  { %2036 = vmatprep.subr.bf16.mxu1 %v2231_v45  ;;  %v2043_v51 = vpack.c.bf16 %v691_v50, %v690_v49 }
  0x84   :  { %413 = vmatmul.mubr.f32.vlgmr.msra.gmra.mrb[0].mxu0 %v71_v54 }
  0x85   :  { %555 = vmatmul.mubr.f32.vlgmr.msra.gmra.mrb[0].mxu1 %v71_v54  ;;  %2007 = vmatpush3.bf16.msra.mxu0 %v2006_v55  ;;  %v2046_v54 = vpack.c.bf16 %v693_v53, %v692_v52  ;;  %v694_v55 = vld [vmem:[%s2665_s3 + $0x40] sm:$0xff] }
  0x86   :  { %2009 = vmatprep.subr.bf16.mxu0 %v2008_v56  ;;  %2038 = vmatpush3.bf16.msra.mxu1 %v2037_v46  ;;  %v695_v56 = vld [vmem:[%s2665_s3 + $0x48] sm:$0xff] }
  0x87   :  { %2039 = vmatprep.subr.bf16.mxu1 %v2231_v45  ;;  %v2049_v57 = vpack.c.bf16 %v695_v56, %v694_v55  ;;  %1745 = vmatprep.mubr.msk.f32.mxu1 %vm2232_vm1, %v2233_v2 }
  0x89   :  { %2011 = vmatpush3.bf16.msra.mxu0 %v2010_v61 }
  0x8a   :  { %2013 = vmatprep.subr.bf16.mxu0 %v2012_v62  ;;  %2041 = vmatpush3.bf16.msra.mxu1 %v2040_v48 }
  0x8b   :  { %2042 = vmatprep.subr.bf16.mxu1 %v2231_v45 }
  0x8d   :  { %2015 = vmatpush3.bf16.msra.mxu0 %v2014_v3 }
  0x8e   :  { %2017 = vmatprep.subr.bf16.mxu0 %v2016_v4  ;;  %2044 = vmatpush3.bf16.msra.mxu1 %v2043_v51 }
  0x8f   :  { %2045 = vmatprep.subr.bf16.mxu1 %v2231_v45 }
  0x91   :  { %2019 = vmatpush3.bf16.msra.mxu0 %v2018_v9 }
  0x92   :  { %2021 = vmatprep.subr.bf16.mxu0 %v2020_v10  ;;  %2047 = vmatpush3.bf16.msra.mxu1 %v2046_v54 }
  0x93   :  { %2048 = vmatprep.subr.bf16.mxu1 %v2231_v45 }
  0x95   :  { %2023 = vmatpush3.bf16.msra.mxu0 %v2022_v15  ;;  %v863_v15 = vld [vmem:[%s2668_s6 + $0x8] sm:$0xff] }
  0x96   :  { %2025 = vmatprep.subr.bf16.mxu0 %v2024_v16  ;;  %2050 = vmatpush3.bf16.msra.mxu1 %v2049_v57  ;;  %v2058_v16 = vpack.c.bf16 %v863_v15, %v862_v14 }
  0x97   :  { %2051 = vmatprep.subr.bf16.mxu1 %v2231_v45 }
  0x99   :  { %2027 = vmatpush3.bf16.msra.mxu0 %v2026_v21 }
  0x9a   :  { %2029 = vmatprep.subr.bf16.mxu0 %v2028_v22  ;;  %2053 = vmatpush3.bf16.msra.mxu1 %v2052_v1  ;;  %v865_v22 = vld [vmem:[%s2671_s9] sm:$0x1]  ;;  %s2235_s9 = smov 96  }
  0x9b   :  { %2054 = vmatprep.subr.bf16.mxu1 %v2231_v45 }
  0x9d   :  { %2031 = vmatpush3.bf16.msra.mxu0 %v2030_v25  ;;  %v2537_v25 = vld [vmem:[%s2670_s8] sm:$0x1]  ;;  %s2236_s8 = smov 16  }
  0x9e   :  { %2033 = vmatprep.subr.bf16.mxu0 %v2032_v28 }
  0xa1   :  { %2035 = vmatpush3.bf16.msra.mxu0 %v2034_v31 }
  0xa2   :  { %2060 = vmatprep.subr.bf16.mxu0 %v2231_v45 }
 0x157   :  { %v414_v32 = vpop.f32.mrb[0].mxu0 }
 0x158   :  { %v561_v33 = vmul.f32 %v414_v32, %v414_v32  ;;  %v556_v34 = vpop.f32.mrb[0].mxu1  ;;  %v416_v35 = vpop.f32.mrb[1].mxu0 }
 0x159   :  { %v563_v36 = vmul.f32 %v556_v34, %v556_v34  ;;  %v562_v37 = vmul.f32 %v416_v35, %v416_v35  ;;  %v558_v38 = vpop.f32.mrb[1].mxu1  ;;  %v963_v35 = vlaneseq }
 0x15a   :  { %v564_v39 = vmul.f32 %v558_v38, %v558_v38 }
 0x15b   :  { %v565_v40 = vadd.f32 %v563_v36, %v561_v33  ;;  %v964_v36 = vshrl.u32 %v963_v35, 7 }
 0x15c   :  { %v566_v41 = vadd.f32 %v564_v39, %v562_v37 }
 0x15d   :  { %v965_v37 = vsub.s32 0, %v964_v36 }
 0x15e   :  { %663 = vmatprep.mubr.f32.mxu0 %v566_v41 }
 0x15f   :  { %664 = vmatmul.mubr.f32.vlgmr.msra.gmra.mrb[2].mxu0 %v565_v40  ;;  %v966_v41 = vrot.slane %v865_v22, %v965_v37 }
 0x160   :  { %1766 = vmatprep.mubr.msk.f32.mxu0 %vm2232_vm1, %v2233_v2  ;;  %2062 = vmatpush3.bf16.msra.mxu0 %v2058_v16 }
 0x161   :  { %2066 = vmatprep.subr.bf16.mxu0 %v2231_v45 }
 0x232   :  { %v1681_v58 = vpop.f32.mrb[2].mxu0 }
 0x233   :  { %v1682_v59 = vpop.f32.mrb[3].mxu0 }
 0x234   :  { %v1683_v60 = vadd.f32 %v1682_v59, %v1681_v58 }
 0x236   :  { %v669_v61 = vmax.f32 %v1683_v60, 1e-09 }
 0x238   :  { %v670_v62 = vmin.f32 %v669_v61, 1e+09 }
 0x23a   :  { %2098 = vlog2.f32 %v670_v62 }
 0x244   :  { %v2099_v3 = vpop.eup %2098 }
 0x245   :  { %v672_v4 = vmul.f32 0.6931472, %v2099_v3 }
 0x247   :  { %v674_v5 = vrot.slane %v672_v4, 1  ;;  %v678_v6 = vrot.slane %v672_v4, 2 }
 0x249   :  { %675 = vrot.lane.b32.xlu0 %v674_v5, %s2230_s21 }
 0x24d   :  { %679 = vrot.lane.b32.xlu0 %v678_v6, %s2234_s22 }
 0x2bb   :  { %v676_v7 = vpop.permute.xlu0 %675 }
 0x2bc   :  { %v683_v8 = vsel %vm682_vm2, %v672_v4, %v676_v7 }
 0x2bf   :  { %v680_v9 = vpop.permute.xlu0 %679 }
 0x2c0   :  { %v685_v10 = vsel %vm684_vm3, %v683_v8, %v680_v9 }
 0x2c1   :  { %1746 = vmatmul.mubr.msk.f32.vlgmr.msra.gmra.mrb[2].mxu1 %vm705_vm4, %v685_v10 }
 0x2c2   :  { %1752 = vmatprep.mubr.msk.f32.mxu1 %vm2232_vm1, %v2233_v2  ;;  %2056 = vmatpush3.bf16.msra.mxu1 %v2055_v13 }
 0x2c3   :  { %2057 = vmatprep.subr.bf16.mxu1 %v2231_v45 }
 0x394   :  { %v775_v18 = vpop.f32.mrb[2].mxu1 }
 0x395   :  { %v776_v19 = vadd.f32 %v1633_v17, %v775_v18  ;;  %v1747_v20 = vpop.f32.mrb[3].mxu1 }
 0x397   :  { %v779_v21 = vmax.f32 %v776_v19, 0.0 }
 0x399   :  { %1753 = vmatmul.mubr.msk.f32.vlgmr.msra.gmra.mrb[4].mxu1 %vm273_vm0, %v779_v21 }
 0x39a   :  { %2059 = vmatpush3.bf16.msra.mxu1 %v2058_v16  ;;  %1759 = vmatprep.mubr.msk.f32.mxu1 %vm2232_vm1, %v2233_v2 }
 0x39b   :  { %2063 = vmatprep.subr.bf16.mxu1 %v2231_v45 }
 0x39d   :  { %1760 = vmatmul.mubr.msk.f32.vlgmr.msra.gmra.mrb[6].mxu1 %vm273_vm0, %v865_v22 }
 0x39e   :  { %2065 = vmatpush3.bf16.msra.mxu1 %v2058_v16  ;;  %1773 = vmatprep.mubr.msk.f32.mxu1 %vm2232_vm1, %v2233_v2 }
 0x39f   :  { %2069 = vmatprep.subr.bf16.mxu1 %v2231_v45 }
 0x46c   :  { %v858_v23 = vpop.f32.mrb[4].mxu1 }
 0x46d   :  { %v1754_v24 = vpop.f32.mrb[5].mxu1  ;;  %v2544_v30 = vadd.f32 %v1635_v29, %v858_v23 }
 0x470   :  { %v935_v26 = vpop.f32.mrb[6].mxu1 }
 0x471   :  { %v936_v27 = vadd.f32 %v935_v26, %v2537_v25  ;;  %v1761_v28 = vpop.f32.mrb[7].mxu1 }
 0x473   :  { %947 = vrot.lane.b32.xlu1 %v936_v27, %s2235_s9  ;;  %v939_v31 = vadd.f32 %v936_v27, %v2544_v30 }
 0x475   :  { %v1638_v32 = vmul.f32 -1.442695, %v939_v31 }
 0x477   :  { %2100 = vpow2.f32 %v1638_v32 }
 0x481   :  { %v2101_v33 = vpop.eup %2100 }
 0x482   :  { %v943_v34 = vadd.f32 1.0, %v2101_v33 }
 0x484   :  { %2102 = vrcp.f32 %v943_v34 }
 0x48e   :  { %v2103_v38 = vpop.eup %2102 }
 0x48f   :  { %v957_v47 = vsub.f32 1.0, %v2103_v38 }
 0x4e5   :  { %v948_v39 = vpop.permute.xlu1 %947 }
 0x4e6   :  { %v950_v40 = vmul.f32 %v2103_v38, %v948_v39 }
 0x4e8   :  { %952 = vrot.lane.b32.xlu1 %v950_v40, %s2230_s21 }
 0x4ec   :  { %967 = vrot.lane.b32.xlu1 %v966_v41, %s2236_s8 }
 0x55a   :  { %v953_v42 = vpop.permute.xlu1 %952 }
 0x55b   :  { %v955_v43 = vadd.f32 %v953_v42, %v2544_v30 }
 0x55d   :  { %2104 = vtanh.f32 %v955_v43 }
 0x55e   :  { %v968_v46 = vpop.permute.xlu1 %967 }
 0x55f   :  { %v970_v49 = vmul.f32 %v2103_v38, %v968_v46 }
 0x567   :  { %v2105_v44 = vpop.eup %2104 }
 0x568   :  { %959 = vrot.lane.b32.xlu0 %v2105_v44, %s2237_s7 }
 0x5da   :  { %v960_v48 = vpop.permute.xlu0 %959 }
 0x5db   :  { %v962_v50 = vmul.f32 %v960_v48, %v957_v47 }
 0x5dd   :  { %v2550_v51 = vadd.f32 %v970_v49, %v962_v50 }
 0x5df   :  { %973 = vrot.lane.b32.xlu0 %v2550_v51, %s2237_s7  ;;  %v1073_v5 = vrot.slane %v2550_v51, 7 }
 0x651   :  { %v974_v52 = vpop.permute.xlu0 %973 }
 0x652   :  { %1767 = vmatmul.mubr.msk.f32.vlgmr.msra.gmra.mrb[4].mxu0 %vm273_vm0, %v974_v52  ;;  %v1308_v52 = vld [vmem:[%s2672_s10 + $0x8] sm:$0xff] }
 0x653   :  { %2068 = vmatpush3.bf16.msra.mxu0 %v2058_v16  ;;  %1780 = vmatprep.mubr.msk.f32.mxu0 %vm2232_vm1, %v2233_v2 }
 0x654   :  { %2072 = vmatprep.subr.bf16.mxu0 %v2231_v45 }
 0x725   :  { %v1043_v53 = vpop.f32.mrb[4].mxu0 }
 0x726   :  { %v1044_v54 = vadd.f32 %v1043_v53, %v2537_v25  ;;  %v1768_v55 = vpop.f32.mrb[5].mxu0 }
 0x728   :  { %v1048_v56 = vrot.slane %v1044_v54, 7 }
 0x72a   :  { %1057 = vrot.lane.b32.xlu1 %v1048_v56, %s2235_s9  ;;  %v1050_v57 = vadd.f32 %v1048_v56, %v2544_v30 }
 0x72c   :  { %v1640_v58 = vmul.f32 -1.442695, %v1050_v57 }
 0x72e   :  { %2106 = vpow2.f32 %v1640_v58 }
 0x738   :  { %v2107_v59 = vpop.eup %2106 }
 0x739   :  { %v1054_v60 = vadd.f32 1.0, %v2107_v59 }
 0x73b   :  { %2108 = vrcp.f32 %v1054_v60 }
 0x745   :  { %v2109_v61 = vpop.eup %2108 }
 0x746   :  { %v1067_v4 = vsub.f32 1.0, %v2109_v61  ;;  %v1075_v8 = vmul.f32 %v2109_v61, %v1073_v5 }
 0x79c   :  { %v1058_v62 = vpop.permute.xlu1 %1057 }
 0x79d   :  { %v1060_v63 = vmul.f32 %v2109_v61, %v1058_v62  ;;  %v1390_v62 = vld [vmem:[%s2674_s12 + $0x8] sm:$0xff] }
 0x79f   :  { %1062 = vrot.lane.b32.xlu0 %v1060_v63, %s2230_s21 }
 0x811   :  { %v1063_v0 = vpop.permute.xlu0 %1062 }
 0x812   :  { %v1065_v1 = vadd.f32 %v1063_v0, %v2544_v30  ;;  %v1645_v0 = vld [vmem:[%s2673_s11] ss:$0 sm:$0xff] }
 0x814   :  { %2110 = vtanh.f32 %v1065_v1 }
 0x81e   :  { %v2111_v3 = vpop.eup %2110 }
 0x81f   :  { %1069 = vrot.lane.b32.xlu1 %v2111_v3, %s2237_s7 }
 0x891   :  { %v1070_v6 = vpop.permute.xlu1 %1069 }
 0x892   :  { %v1072_v7 = vmul.f32 %v1070_v6, %v1067_v4 }
 0x894   :  { %v1076_v9 = vadd.f32 %v1075_v8, %v1072_v7 }
 0x896   :  { %v1078_v10 = vrot.slane %v1076_v9, 1  ;;  %v1179_v28 = vrot.slane %v1076_v9, 7  ;;  %v1290_v34 = vsel %vm1289_vm5, %v2550_v51, %v1076_v9 }
 0x898   :  { %1079 = vrot.lane.b32.xlu0 %v1078_v10, %s2237_s7 }
 0x90a   :  { %v1080_v11 = vpop.permute.xlu0 %1079 }
 0x90b   :  { %1774 = vmatmul.mubr.msk.f32.vlgmr.msra.gmra.mrb[8].mxu1 %vm273_vm0, %v1080_v11 }
 0x90c   :  { %1787 = vmatprep.mubr.msk.f32.mxu1 %vm2232_vm1, %v2233_v2 }
 0x9de   :  { %v1149_v12 = vpop.f32.mrb[8].mxu1 }
 0x9df   :  { %v1150_v13 = vadd.f32 %v1149_v12, %v2537_v25  ;;  %v1775_v14 = vpop.f32.mrb[9].mxu1 }
 0x9e1   :  { %v1154_v15 = vrot.slane %v1150_v13, 6 }
 0x9e3   :  { %1163 = vrot.lane.b32.xlu1 %v1154_v15, %s2235_s9  ;;  %v1156_v16 = vadd.f32 %v1154_v15, %v2544_v30 }
 0x9e5   :  { %v1642_v17 = vmul.f32 -1.442695, %v1156_v16 }
 0x9e7   :  { %2112 = vpow2.f32 %v1642_v17 }
 0x9f1   :  { %v2113_v18 = vpop.eup %2112 }
 0x9f2   :  { %v1160_v19 = vadd.f32 1.0, %v2113_v18 }
 0x9f4   :  { %2114 = vrcp.f32 %v1160_v19 }
 0x9fe   :  { %v2115_v20 = vpop.eup %2114 }
 0x9ff   :  { %v1173_v27 = vsub.f32 1.0, %v2115_v20  ;;  %v1181_v31 = vmul.f32 %v2115_v20, %v1179_v28  ;;  %v1498_v28 = vld [vmem:[%s2675_s13] sm:$0xff] }
 0xa55   :  { %v1164_v21 = vpop.permute.xlu1 %1163 }
 0xa56   :  { %v1166_v22 = vmul.f32 %v2115_v20, %v1164_v21 }
 0xa58   :  { %1168 = vrot.lane.b32.xlu0 %v1166_v22, %s2230_s21 }
 0xaca   :  { %v1169_v23 = vpop.permute.xlu0 %1168 }
 0xacb   :  { %v1171_v24 = vadd.f32 %v1169_v23, %v2544_v30 }
 0xacd   :  { %2116 = vtanh.f32 %v1171_v24 }
 0xad7   :  { %v2117_v26 = vpop.eup %2116 }
 0xad8   :  { %1175 = vrot.lane.b32.xlu1 %v2117_v26, %s2237_s7 }
 0xb4a   :  { %v1176_v29 = vpop.permute.xlu1 %1175 }
 0xb4b   :  { %v1178_v32 = vmul.f32 %v1176_v29, %v1173_v27  ;;  %v1499_v29 = vld [vmem:[%s2675_s13 + $0x8] sm:$0xff]  ;;  %s2239_s13 = smov [#allocation6]  }
 0xb4c   :  { %s1605_s0 = sshll.u32 %s2239_s13, 4  ;;  %s1606_s0 = int_to_ptr.vmem [resolvable:$true] %s1605_s0 }
 0xb4d   :  { %v1182_v33 = vadd.f32 %v1181_v31, %v1178_v32  ;;  %v2076_v31 = vpack.c.bf16 %v1499_v29, %v1498_v28  ;;  %s2156_s5 = scalar_lea.vmem %s1606_s0, 64  ;;  %p2161_p9 = scmp.lt.s32.totalorder %s1606_s0, %s1606_s0 }
 0xb4e   :  { %p2157_p8 = scmp.ne.s32.totalorder %s1606_s0, %s2156_s5  ;;  %p2162_p10 = scmp.lt.s32.totalorder %s2156_s5, %s2156_s5 }
 0xb4f   :  { %v1184_v35 = vrot.slane %v1182_v33, 2  ;;  %v1292_v36 = vsel %vm1291_vm6, %v1290_v34, %v1182_v33  ;;  %v1285_v56 = vrot.slane %v1182_v33, 7 }
 0xb50   :  { %p2163_p11 = por %p2162_p10, %p2161_p9 }
 0xb51   :  { %1185 = vrot.lane.b32.xlu0 %v1184_v35, %s2237_s7 }
 0xb52   :  { %p2164_p12 = pnand %p2163_p11, %p2157_p8 }
 0xbc3   :  { %v1186_v37 = vpop.permute.xlu0 %1185 }
 0xbc4   :  { %1781 = vmatmul.mubr.msk.f32.vlgmr.msra.gmra.mrb[6].mxu0 %vm273_vm0, %v1186_v37 }
 0xbc5   :  { %1794 = vmatprep.mubr.msk.f32.mxu0 %vm2232_vm1, %v2233_v2 }
 0xc97   :  { %v1255_v38 = vpop.f32.mrb[6].mxu0 }
 0xc98   :  { %v1256_v39 = vadd.f32 %v1255_v38, %v2537_v25  ;;  %v1782_v40 = vpop.f32.mrb[7].mxu0  ;;  %v1307_v25 = vld [vmem:[%s2672_s10] sm:$0xff] }
 0xc99   :  { %v2070_v53 = vpack.c.bf16 %v1308_v52, %v1307_v25 }
 0xc9a   :  { %v1260_v41 = vrot.slane %v1256_v39, 5 }
 0xc9b   :  { %2071 = vmatpush3.bf16.msra.mxu1 %v2070_v53 }
 0xc9c   :  { %1269 = vrot.lane.b32.xlu1 %v1260_v41, %s2235_s9  ;;  %v1262_v42 = vadd.f32 %v1260_v41, %v2544_v30  ;;  %2075 = vmatprep.subr.bf16.mxu1 %v2231_v45  ;;  %v1389_v45 = vld [vmem:[%s2674_s12] sm:$0xff] }
 0xc9d   :  { %v2073_v63 = vpack.c.bf16 %v1390_v62, %v1389_v45 }
 0xc9e   :  { %v1644_v43 = vmul.f32 -1.442695, %v1262_v42  ;;  %v1500_v42 = vld [vmem:[%s2676_s14] sm:$0x1] }
 0xc9f   :  { %2074 = vmatpush3.bf16.msra.mxu0 %v2073_v63 }
 0xca0   :  { %2118 = vpow2.f32 %v1644_v43 }
 0xcaa   :  { %v2119_v44 = vpop.eup %2118 }
 0xcab   :  { %v1266_v46 = vadd.f32 1.0, %v2119_v44 }
 0xcad   :  { %2120 = vrcp.f32 %v1266_v46 }
 0xcb7   :  { %v2121_v47 = vpop.eup %2120 }
 0xcb8   :  { %v1279_v55 = vsub.f32 1.0, %v2121_v47 }
 0xd0e   :  { %v1270_v48 = vpop.permute.xlu1 %1269 }
 0xd0f   :  { %v1272_v49 = vmul.f32 %v2121_v47, %v1270_v48 }
 0xd11   :  { %1274 = vrot.lane.b32.xlu0 %v1272_v49, %s2230_s21 }
 0xd83   :  { %v1275_v50 = vpop.permute.xlu0 %1274 }
 0xd84   :  { %v1277_v51 = vadd.f32 %v1275_v50, %v2544_v30  ;;  %v1287_v30 = vmul.f32 %v2121_v47, %v1285_v56 }
 0xd86   :  { %2122 = vtanh.f32 %v1277_v51 }
 0xd90   :  { %v2123_v54 = vpop.eup %2122 }
 0xd91   :  { %1281 = vrot.lane.b32.xlu1 %v2123_v54, %s2237_s7 }
 0xe03   :  { %v1282_v57 = vpop.permute.xlu1 %1281 }
 0xe04   :  { %v1284_v58 = vmul.f32 %v1282_v57, %v1279_v55 }
 0xe06   :  { %v2593_v59 = vadd.f32 %v1287_v30, %v1284_v58 }
 0xe08   :  { %v1294_v60 = vsel %vm1293_vm7, %v1292_v36, %v2593_v59 }
 0xe09   :  { %1296 = vrot.lane.b32.xlu0 %v1294_v60, %s2237_s7 }
 0xe7b   :  { %v1297_v61 = vpop.permute.xlu0 %1296 }
 0xe7c   :  { %1788 = vmatmul.mubr.msk.f32.vlgmr.msra.gmra.mrb[10].mxu1 %vm273_vm0, %v1297_v61  ;;  %1300 = vst.msk [vmem:[#allocation6] sm:$0xf] %vm1299_vm8, %v1297_v61 }
 0xe7d   :  { %1801 = vmatprep.mubr.msk.f32.mxu1 %vm2232_vm1, %v2233_v2  ;;  %v2238_v2 = vmov 0   ;;  %2077 = vmatpush3.bf16.msra.mxu1 %v2076_v31 }
 0xe7e   :  { %2096 = vset.pattern.permute.xlu1 %v2238_v2  ;;  %2097 = vset.pattern.permute.xlu0 %v2238_v2 }
 0xf4f   :  { %v1384_v1 = vpop.f32.mrb[10].mxu1 }
 0xf50   :  { %v1385_v3 = vadd.f32 %v1645_v0, %v1384_v1  ;;  %v1789_v4 = vpop.f32.mrb[11].mxu1 }
 0xf52   :  { %2124 = vtanh.f32 %v1385_v3 }
 0xf5c   :  { %v2125_v5 = vpop.eup %2124 }
 0xf5d   :  { %1795 = vmatmul.mubr.msk.f32.vlgmr.msra.gmra.mrb[8].mxu0 %vm273_vm0, %v2125_v5 }
0x1030   :  { %v1460_v6 = vpop.f32.mrb[8].mxu0 }
0x1031   :  { %v1465_v7 = vsel %vm1464_vm9, %v1460_v6, -inf  ;;  %v1796_v8 = vpop.f32.mrb[9].mxu0 }
0x1032   :  { %v1466_v9 = vrot.slane %v1465_v7, 4 }
0x1034   :  { %v1467_v10 = vmax.f32 %v1465_v7, %v1466_v9 }
0x1036   :  { %v1468_v11 = vrot.slane %v1467_v10, 2 }
0x1038   :  { %v1469_v12 = vmax.f32 %v1467_v10, %v1468_v11 }
0x103a   :  { %v1470_v13 = vrot.slane %v1469_v12, 1 }
0x103c   :  { %v1471_v14 = vmax.f32 %v1469_v12, %v1470_v13 }
0x103e   :  { %v1472_v15 = vsub.f32 %v1460_v6, %v1471_v14 }
0x1040   :  { %v1473_v16 = vmul.f32 1.442695, %v1472_v15 }
0x1042   :  { %2126 = vpow2.f32 %v1473_v16 }
0x104c   :  { %v2127_v17 = vpop.eup %2126 }
0x104d   :  { %v1475_v18 = vsel %vm1464_vm9, %v2127_v17, 0.0 }
0x104e   :  { %v1476_v19 = vrot.slane %v1475_v18, 4 }
0x1050   :  { %v1477_v20 = vadd.f32 %v1476_v19, %v1475_v18 }
0x1052   :  { %v1478_v21 = vrot.slane %v1477_v20, 2 }
0x1054   :  { %v1479_v22 = vadd.f32 %v1478_v21, %v1477_v20 }
0x1056   :  { %v1480_v23 = vrot.slane %v1479_v22, 1 }
0x1058   :  { %v1481_v24 = vadd.f32 %v1480_v23, %v1479_v22 }
0x105a   :  { %2128 = vrcp.f32 %v1481_v24 }
0x1064   :  { %v2129_v26 = vpop.eup %2128 }
0x1065   :  { %v1483_v27 = vmul.f32 %v2129_v26, %v2127_v17 }
0x1067   :  { %1486 = vperm.xlu1 %2096, %v1483_v27  }
0x10e6   :  { %v1487_v32 = vpop.permute.xlu1 %1486 }
0x10e7   :  { %v1489_v33 = vmul.f32 %v1487_v32, %v1294_v60 }
0x10e9   :  { %v1491_v34 = vsel %vm1490_vm10, %v1489_v33, 0.0 }
0x10ea   :  { %v1492_v35 = vrot.slane %v1491_v34, 4 }
0x10ec   :  { %v1493_v36 = vadd.f32 %v1492_v35, %v1491_v34 }
0x10ee   :  { %v1494_v37 = vrot.slane %v1493_v36, 2 }
0x10f0   :  { %v1495_v38 = vadd.f32 %v1494_v37, %v1493_v36 }
0x10f2   :  { %v1496_v39 = vrot.slane %v1495_v38, 1 }
0x10f4   :  { %v1497_v40 = vadd.f32 %v1496_v39, %v1495_v38 }
0x10f6   :  { %1502 = vrot.lane.b32.xlu0 %v1497_v40, %s2237_s7 }
0x1168   :  { %v1503_v41 = vpop.permute.xlu0 %1502 }
0x1169   :  { %1802 = vmatmul.mubr.msk.f32.vlgmr.msra.gmra.mrb[12].mxu1 %vm273_vm0, %v1503_v41 }
0x123c   :  { %v1572_v43 = vpop.f32.mrb[12].mxu1 }
0x123d   :  { %v1573_v44 = vadd.f32 %v1572_v43, %v1500_v42  ;;  %v1803_v46 = vpop.f32.mrb[13].mxu1 }
0x123f   :  { %v1577_v47 = vsel %vm1576_vm11, %v1573_v44, -inf }
0x1240   :  { %1578 = vmax.xlane.f32.xlu1 %v1577_v47 }
0x12cd   :  { %v1579_v48 = vpop.xlane.xlu1 %1578 }
0x12ce   :  { %v1580_v49 = vsub.f32 %v1573_v44, %v1579_v48 }
0x12d0   :  { %v1581_v50 = vmul.f32 1.442695, %v1580_v49 }
0x12d2   :  { %2130 = vpow2.f32 %v1581_v50 }
0x12dc   :  { %v2131_v51 = vpop.eup %2130 }
0x12dd   :  { %v1583_v25 = vsel %vm1576_vm11, %v2131_v51, 0.0 }
0x12de   :  { %1584 = vadd.xlane.f32.xlu0 %v1583_v25 }
0x12df   :  { %2167 = shalt.err (!%p2164_p12)
}
0x12e0   :  { %s2168_s4 = scalar_lea.hbm %s2678_s16, 64 }
0x12e1   :  { %p2169_p13 = scmp.ne.s32.totalorder %s2678_s16, %s2168_s4  ;;  %p2172_p0 = scmp.lt.u32.totalorder %s2168_s4, %s2678_s16 }
0x12e3   :  { %p2174_p1 = pnand %p2172_p0, %p2169_p13 }
0x12e5   :  { %2177 = shalt.err (!%p2174_p1)
}
0x12e6   :  { %1608 = dma.vmem_to_hbm [thread:$0]  %s1606_s0, 64, %s2678_s16, [#allocation7]   ;;  %vm1305_vm12 = vcmask 125955  }
0x12e7   :  { %s2240_s20 = smov [#allocation8]  }
0x12e8   :  { %s1615_s22 = sshll.u32 %s2240_s20, 4  ;;  %s1616_s22 = int_to_ptr.vmem [resolvable:$true] %s1615_s22 }
0x12e9   :  { %s2178_s3 = scalar_lea.vmem %s1616_s22, 16  ;;  %s2182_s10 = scalar_lea.vmem %s1616_s22, 32 }
0x12ea   :  { %p2179_p2 = scmp.ne.s32.totalorder %s1616_s22, %s2178_s3  ;;  %p2183_p3 = scmp.lt.s32.totalorder %s1616_s22, %s1616_s22 }
0x12eb   :  { %p2184_p4 = scmp.lt.s32.totalorder %s2182_s10, %s2178_s3 }
0x12ed   :  { %p2185_p5 = por %p2184_p4, %p2183_p3 }
0x12ef   :  { %p2186_p6 = pnand %p2185_p5, %p2179_p2 }
0x12f4   :  { %1302 = vrot.lane.b32.xlu0 %v2593_v59, %s2237_s7 }
0x136b   :  { %v1585_v52 = vpop.xlane.xlu0 %1584 }
0x136c   :  { %2132 = vrcp.f32 %v1585_v52 }
0x136f   :  { %v1303_v53 = vpop.permute.xlu0 %1302 }
0x1370   :  { %1306 = vst.msk [vmem:[#allocation8 - $0x3] sm:$0x8] %vm1305_vm12, %v1303_v53 }
0x1371   :  { %2189 = shalt.err (!%p2186_p6)
}
0x1372   :  { %s2190_s7 = scalar_lea.hbm %s2679_s17, 16 }
0x1373   :  { %p2191_p7 = scmp.ne.s32.totalorder %s2679_s17, %s2190_s7  ;;  %p2194_p8 = scmp.lt.u32.totalorder %s2190_s7, %s2679_s17 }
0x1375   :  { %p2196_p9 = pnand %p2194_p8, %p2191_p7 }
0x1377   :  { %2199 = shalt.err (!%p2196_p9)
}
0x1378   :  { %1618 = dma.vmem_to_hbm [thread:$0]  %s1616_s22, 16, %s2679_s17, [#allocation7]   ;;  %v2133_v54 = vpop.eup %2132 }
0x1379   :  { %s2241_s27 = smov [#allocation5]   ;;  %v1587_v55 = vmul.f32 %v2133_v54, %v2131_v51 }
0x137a   :  { %s1595_s28 = sshll.u32 %s2241_s27, 4  ;;  %s1596_s28 = int_to_ptr.vmem [resolvable:$true] %s1595_s28 }
0x137b   :  { %1588 = vst.msk [vmem:[#allocation5] sm:$0x1] %vm1576_vm11, %v1587_v55  ;;  %s2200_s29 = scalar_lea.vmem %s1596_s28, 16  ;;  %s2204_s2 = scalar_lea.vmem %s1596_s28, 32 }
0x137c   :  { %p2201_p10 = scmp.ne.s32.totalorder %s1596_s28, %s2200_s29  ;;  %p2205_p11 = scmp.lt.s32.totalorder %s1596_s28, %s1596_s28 }
0x137d   :  { %p2206_p12 = scmp.lt.s32.totalorder %s2204_s2, %s2200_s29 }
0x137f   :  { %p2207_p13 = por %p2206_p12, %p2205_p11 }
0x1381   :  { %p2208_p0 = pnand %p2207_p13, %p2201_p10 }
0x1383   :  { %2211 = shalt.err (!%p2208_p0)
}
0x1384   :  { %s2212_s5 = scalar_lea.hbm %s2677_s15, 16 }
0x1385   :  { %p2213_p1 = scmp.ne.s32.totalorder %s2677_s15, %s2212_s5  ;;  %p2216_p2 = scmp.lt.u32.totalorder %s2212_s5, %s2677_s15 }
0x1387   :  { %p2218_p3 = pnand %p2216_p2, %p2213_p1 }
0x1389   :  { %2221 = shalt.err (!%p2218_p3)
}
0x138a   :  { %1598 = dma.vmem_to_hbm [thread:$0]  %s1596_s28, 16, %s2677_s15, [#allocation4]  }
0x138b   :  { %2224 = dma.done.wait [#allocation4], 16  }
0x138c   :  { %2225 = vsyncadd [#allocation4], 4294967280 }
0x138d   :  { %2226 = dma.done.wait [#allocation7], 80  }
0x138e   :  { %2227 = vsyncadd [#allocation7], 4294967216 }
0x138f   :  { %1628 = vsyncpa [#allocation3], 1 }
0x1390   :  { %1629 = vsyncpa [#allocation4], 1 }
0x1391   :  { %1630 = vsyncpa [#allocation7], 1 }

</bundles_post_ra>
